<compile_context>
chip_gen: v5e
topology: v5e:2x2
jax: 0.10.0
libtpu: 0.0.40
codegen_flags: <defaults>
</compile_context>

<pallas_src>
import jax
import jax.numpy as jnp
from jax import lax
from jax.experimental import pallas as pl
from jax.experimental.pallas import tpu as pltpu

DROP_P = 0.02


def _make_kernel(batch: int, hidden: int, k_sparse: int):
    def kernel(x_ref, m_ref, w_ref, o_ref):
        # x_ref, m_ref: (B, C+1, T)   w_ref: (2H, C+1)   o_ref: (B, H, T)
        if k_sparse <= 0:
            # torch.topk with k=0 keeps nothing -> gated output is all zeros.
            o_ref[...] = jnp.zeros(o_ref.shape, o_ref.dtype)
            return

        w = w_ref[...]  # fused [W_up; W_sal] with bias column, loaded once

        # Static unroll over batch: the per-batch chains are data-independent, so the
        # scheduler interleaves their latency-critical reductions.
        for b in range(batch):
            # dropout (keep-mask already carries the 1/(1-p) rescale; bias row == 1)
            xd = x_ref[b] * m_ref[b]                                     # (C+1, T)
            # fused 1x1 convs + bias: one MXU matmul
            z = jnp.dot(w, xd, preferred_element_type=jnp.float32)       # (2H, T)
            sig = z[:hidden]                                             # (H, T)
            logits = z[hidden:]                                          # (H, T)

            # --- top-k threshold on the logits (softmax is monotone -> same mask) ---
            k = min(k_sparse, logits.size)

            def peel(i, carry):
                work, _ = carry
                cur = jnp.max(work)
                return jnp.where(work >= cur, -jnp.inf, work), cur

            _, kth = lax.fori_loop(
                0, k, peel,
                (logits, jnp.full((), -jnp.inf, jnp.float32)),
                unroll=True,
            )

            # --- softmax over the flattened (hidden*T) values of this batch element ---
            m_all = jnp.max(logits)
            e = jnp.exp(logits - m_all)
            sal = e / jnp.sum(e)

            # --- sparsify: keep the k largest salience values, zero the rest ---
            # TODO(synk): torch.topk keeps exactly k on ties; an exact tie at the k-th
            # logit would keep a few extra elements here (measure-zero for float data).
            sal = jnp.where(logits >= kth, sal, 0.0)

            o_ref[b] = (sig * sal).astype(o_ref.dtype)

    return kernel


def sparse_bottleneck(x, params, k_sparse, *, key=None, training=True):
    """x: (batch, in_channels, time) float32 -> (batch, hidden_channels, time).

    training=True reproduces F.dropout's default (dropout applied, 1/(1-p) rescale);
    training=False skips dropout.
    """
    B, C, T = x.shape
    H = params["w_up"].shape[0]

    # Dropout keep-mask with the rescale folded in (generated on host; see header).
    if training:
        if key is None:
            key = jax.random.PRNGKey(0)
        keep = jax.random.bernoulli(key, 1.0 - DROP_P, x.shape)
        mask = keep.astype(x.dtype) * (1.0 / (1.0 - DROP_P))
    else:
        mask = jnp.ones_like(x)

    # Fold the biases into the matmul: append a ones-row to x (never dropped) and a
    # bias column to the fused weight.
    ones_row = jnp.ones((B, 1, T), x.dtype)
    x_aug = jnp.concatenate([x, ones_row], axis=1)       # (B, C+1, T)
    m_aug = jnp.concatenate([mask, ones_row], axis=1)    # (B, C+1, T)

    w_fused = jnp.concatenate([params["w_up"], params["w_sal"]], axis=0)  # (2H, C)
    b_fused = jnp.concatenate([params["b_up"], params["b_sal"]], axis=0)  # (2H, 1)
    w_aug = jnp.concatenate([w_fused, b_fused], axis=1)                   # (2H, C+1)

    return pl.pallas_call(
        _make_kernel(B, H, k_sparse),
        out_shape=jax.ShapeDtypeStruct((B, H, T), x.dtype),
        grid=(1,),  # single invocation: whole problem resident in VMEM
        in_specs=[
            pl.BlockSpec((B, C + 1, T), lambda i: (0, 0, 0)),   # x (+ ones row)
            pl.BlockSpec((B, C + 1, T), lambda i: (0, 0, 0)),   # dropout keep-mask
            pl.BlockSpec((2 * H, C + 1), lambda i: (0, 0)),     # fused [W_up;W_sal | b]
        ],
        out_specs=pl.BlockSpec((B, H, T), lambda i: (0, 0, 0)),
        compiler_params=pltpu.CompilerParams(dimension_semantics=("arbitrary",)),
    )(x_aug, m_aug, w_aug)


if __name__ == "__main__":
    # Small shapes consistent with the module: batch=2, in_channels=8,
    # hidden_channels=16, time=128, k_sparse=16.
    B, C_IN, HIDDEN, T, K_SPARSE = 2, 8, 16, 128, 16

    root = jax.random.PRNGKey(0)
    k1, k2, k3, k4, k5, kdrop = jax.random.split(root, 6)
    x = jax.random.normal(k1, (B, C_IN, T), dtype=jnp.float32)
    params = dict(
        w_up=jax.random.normal(k2, (HIDDEN, C_IN), jnp.float32) / jnp.sqrt(C_IN),
        b_up=jax.random.normal(k3, (HIDDEN, 1), jnp.float32) * 0.01,
        w_sal=jax.random.normal(k4, (HIDDEN, C_IN), jnp.float32) / jnp.sqrt(C_IN),
        b_sal=jax.random.normal(k5, (HIDDEN, 1), jnp.float32) * 0.01,
    )

    out = sparse_bottleneck(x, params, K_SPARSE, key=kdrop)
    out = jax.block_until_ready(out)

    assert out.shape == (B, HIDDEN, T)
    assert bool(jnp.all(jnp.isfinite(out)))
    # sparsify sanity: at most k_sparse salience-gated nonzeros per batch element
    for b in range(B):
        assert int(jnp.sum(out[b] != 0)) <= K_SPARSE
    print("KERNEL_OK")
</pallas_src>

<mosaic_0001>
module attributes {stable_mosaic.version = 11 : i64} {
  func.func @kernel(%arg0: i32, %arg1: memref<2x9x128xf32, #tpu.memory_space<vmem>>, %arg2: memref<2x9x128xf32, #tpu.memory_space<vmem>>, %arg3: memref<32x9xf32, #tpu.memory_space<vmem>>, %arg4: memref<2x16x128xf32, #tpu.memory_space<vmem>>) attributes {dimension_semantics = [#tpu.dimension_semantics<arbitrary>], iteration_bounds = array<i64: 1>, scalar_prefetch = 0 : i64, scratch_operands = 0 : i64, tpu.core_type = #tpu.core_type<tc>, window_params = [{pipeline_mode = #tpu.pipeline_mode<synchronous>, transform_indices = @transform_0, window_bounds = array<i64: 2, 9, 128>}, {pipeline_mode = #tpu.pipeline_mode<synchronous>, transform_indices = @transform_1, window_bounds = array<i64: 2, 9, 128>}, {pipeline_mode = #tpu.pipeline_mode<synchronous>, transform_indices = @transform_2, window_bounds = array<i64: 32, 9>}, {pipeline_mode = #tpu.pipeline_mode<synchronous>, transform_indices = @transform_3, window_bounds = array<i64: 2, 16, 128>}]} {
    %c0 = arith.constant 0 : index
    %c0_0 = arith.constant 0 : index
    %0 = vector.load %arg3[%c0, %c0_0] : memref<32x9xf32, #tpu.memory_space<vmem>>, vector<32x9xf32>
    %c0_1 = arith.constant 0 : index
    %c0_2 = arith.constant 0 : index
    %c0_3 = arith.constant 0 : index
    %1 = vector.load %arg1[%c0_1, %c0_2, %c0_3] : memref<2x9x128xf32, #tpu.memory_space<vmem>>, vector<1x9x128xf32>
    %2 = vector.shape_cast %1 : vector<1x9x128xf32> to vector<9x128xf32>
    %c0_4 = arith.constant 0 : index
    %c0_5 = arith.constant 0 : index
    %c0_6 = arith.constant 0 : index
    %3 = vector.load %arg2[%c0_4, %c0_5, %c0_6] : memref<2x9x128xf32, #tpu.memory_space<vmem>>, vector<1x9x128xf32>
    %4 = vector.shape_cast %3 : vector<1x9x128xf32> to vector<9x128xf32>
    %5 = arith.mulf %2, %4 : vector<9x128xf32>
    %cst = arith.constant dense<0.000000e+00> : vector<32x128xf32>
    %6 = tpu.matmul %0, %5, %cst {dimension_numbers = #tpu.dot_dimension_numbers<[1], [0], [0], [1], [0, 0, 1, 1], [], []>} : vector<32x9xf32>, vector<9x128xf32>, vector<32x128xf32> -> vector<32x128xf32>
    %7 = vector.extract_strided_slice %6 {offsets = [0, 0], sizes = [16, 128], strides = [1, 1]} : vector<32x128xf32> to vector<16x128xf32>
    %8 = vector.extract_strided_slice %6 {offsets = [16, 0], sizes = [16, 128], strides = [1, 1]} : vector<32x128xf32> to vector<16x128xf32>
    %cst_7 = arith.constant 0xFF800000 : f32
    %c0_i32 = arith.constant 0 : i32
    %9 = vector.shape_cast %8 : vector<16x128xf32> to vector<1x16x128xf32>
    %cst_8 = arith.constant dense<0xFF800000> : vector<1xf32>
    %10 = vector.multi_reduction <maximumf>, %9, %cst_8 [1, 2] : vector<1x16x128xf32> to vector<1xf32>
    %11 = vector.shape_cast %10 : vector<1xf32> to vector<1x1x1xf32>
    %12 = vector.extract %11[0, 0, 0] : f32 from vector<1x1x1xf32>
    %13 = vector.broadcast %12 : f32 to vector<16x128xf32>
    %14 = arith.cmpf oge, %8, %13 : vector<16x128xf32>
    %cst_9 = arith.constant 0xFF800000 : f32
    %15 = vector.broadcast %cst_9 : f32 to vector<16x128xf32>
    %16 = arith.select %14, %15, %8 : vector<16x128xi1>, vector<16x128xf32>
    %c1_i32 = arith.constant 1 : i32
    %17 = vector.shape_cast %16 : vector<16x128xf32> to vector<1x16x128xf32>
    %cst_10 = arith.constant dense<0xFF800000> : vector<1xf32>
    %18 = vector.multi_reduction <maximumf>, %17, %cst_10 [1, 2] : vector<1x16x128xf32> to vector<1xf32>
    %19 = vector.shape_cast %18 : vector<1xf32> to vector<1x1x1xf32>
    %20 = vector.extract %19[0, 0, 0] : f32 from vector<1x1x1xf32>
    %21 = vector.broadcast %20 : f32 to vector<16x128xf32>
    %22 = arith.cmpf oge, %16, %21 : vector<16x128xf32>
    %cst_11 = arith.constant 0xFF800000 : f32
    %23 = vector.broadcast %cst_11 : f32 to vector<16x128xf32>
    %24 = arith.select %22, %23, %16 : vector<16x128xi1>, vector<16x128xf32>
    %c2_i32 = arith.constant 2 : i32
    %25 = vector.shape_cast %24 : vector<16x128xf32> to vector<1x16x128xf32>
    %cst_12 = arith.constant dense<0xFF800000> : vector<1xf32>
    %26 = vector.multi_reduction <maximumf>, %25, %cst_12 [1, 2] : vector<1x16x128xf32> to vector<1xf32>
    %27 = vector.shape_cast %26 : vector<1xf32> to vector<1x1x1xf32>
    %28 = vector.extract %27[0, 0, 0] : f32 from vector<1x1x1xf32>
    %29 = vector.broadcast %28 : f32 to vector<16x128xf32>
    %30 = arith.cmpf oge, %24, %29 : vector<16x128xf32>
    %cst_13 = arith.constant 0xFF800000 : f32
    %31 = vector.broadcast %cst_13 : f32 to vector<16x128xf32>
    %32 = arith.select %30, %31, %24 : vector<16x128xi1>, vector<16x128xf32>
    %c3_i32 = arith.constant 3 : i32
    %33 = vector.shape_cast %32 : vector<16x128xf32> to vector<1x16x128xf32>
    %cst_14 = arith.constant dense<0xFF800000> : vector<1xf32>
    %34 = vector.multi_reduction <maximumf>, %33, %cst_14 [1, 2] : vector<1x16x128xf32> to vector<1xf32>
    %35 = vector.shape_cast %34 : vector<1xf32> to vector<1x1x1xf32>
    %36 = vector.extract %35[0, 0, 0] : f32 from vector<1x1x1xf32>
    %37 = vector.broadcast %36 : f32 to vector<16x128xf32>
    %38 = arith.cmpf oge, %32, %37 : vector<16x128xf32>
    %cst_15 = arith.constant 0xFF800000 : f32
    %39 = vector.broadcast %cst_15 : f32 to vector<16x128xf32>
    %40 = arith.select %38, %39, %32 : vector<16x128xi1>, vector<16x128xf32>
    %c4_i32 = arith.constant 4 : i32
    %41 = vector.shape_cast %40 : vector<16x128xf32> to vector<1x16x128xf32>
    %cst_16 = arith.constant dense<0xFF800000> : vector<1xf32>
    %42 = vector.multi_reduction <maximumf>, %41, %cst_16 [1, 2] : vector<1x16x128xf32> to vector<1xf32>
    %43 = vector.shape_cast %42 : vector<1xf32> to vector<1x1x1xf32>
    %44 = vector.extract %43[0, 0, 0] : f32 from vector<1x1x1xf32>
    %45 = vector.broadcast %44 : f32 to vector<16x128xf32>
    %46 = arith.cmpf oge, %40, %45 : vector<16x128xf32>
    %cst_17 = arith.constant 0xFF800000 : f32
    %47 = vector.broadcast %cst_17 : f32 to vector<16x128xf32>
    %48 = arith.select %46, %47, %40 : vector<16x128xi1>, vector<16x128xf32>
    %c5_i32 = arith.constant 5 : i32
    %49 = vector.shape_cast %48 : vector<16x128xf32> to vector<1x16x128xf32>
    %cst_18 = arith.constant dense<0xFF800000> : vector<1xf32>
    %50 = vector.multi_reduction <maximumf>, %49, %cst_18 [1, 2] : vector<1x16x128xf32> to vector<1xf32>
    %51 = vector.shape_cast %50 : vector<1xf32> to vector<1x1x1xf32>
    %52 = vector.extract %51[0, 0, 0] : f32 from vector<1x1x1xf32>
    %53 = vector.broadcast %52 : f32 to vector<16x128xf32>
    %54 = arith.cmpf oge, %48, %53 : vector<16x128xf32>
    %cst_19 = arith.constant 0xFF800000 : f32
    %55 = vector.broadcast %cst_19 : f32 to vector<16x128xf32>
    %56 = arith.select %54, %55, %48 : vector<16x128xi1>, vector<16x128xf32>
    %c6_i32 = arith.constant 6 : i32
    %57 = vector.shape_cast %56 : vector<16x128xf32> to vector<1x16x128xf32>
    %cst_20 = arith.constant dense<0xFF800000> : vector<1xf32>
    %58 = vector.multi_reduction <maximumf>, %57, %cst_20 [1, 2] : vector<1x16x128xf32> to vector<1xf32>
    %59 = vector.shape_cast %58 : vector<1xf32> to vector<1x1x1xf32>
    %60 = vector.extract %59[0, 0, 0] : f32 from vector<1x1x1xf32>
    %61 = vector.broadcast %60 : f32 to vector<16x128xf32>
    %62 = arith.cmpf oge, %56, %61 : vector<16x128xf32>
    %cst_21 = arith.constant 0xFF800000 : f32
    %63 = vector.broadcast %cst_21 : f32 to vector<16x128xf32>
    %64 = arith.select %62, %63, %56 : vector<16x128xi1>, vector<16x128xf32>
    %c7_i32 = arith.constant 7 : i32
    %65 = vector.shape_cast %64 : vector<16x128xf32> to vector<1x16x128xf32>
    %cst_22 = arith.constant dense<0xFF800000> : vector<1xf32>
    %66 = vector.multi_reduction <maximumf>, %65, %cst_22 [1, 2] : vector<1x16x128xf32> to vector<1xf32>
    %67 = vector.shape_cast %66 : vector<1xf32> to vector<1x1x1xf32>
    %68 = vector.extract %67[0, 0, 0] : f32 from vector<1x1x1xf32>
    %69 = vector.broadcast %68 : f32 to vector<16x128xf32>
    %70 = arith.cmpf oge, %64, %69 : vector<16x128xf32>
    %cst_23 = arith.constant 0xFF800000 : f32
    %71 = vector.broadcast %cst_23 : f32 to vector<16x128xf32>
    %72 = arith.select %70, %71, %64 : vector<16x128xi1>, vector<16x128xf32>
    %c8_i32 = arith.constant 8 : i32
    %73 = vector.shape_cast %72 : vector<16x128xf32> to vector<1x16x128xf32>
    %cst_24 = arith.constant dense<0xFF800000> : vector<1xf32>
    %74 = vector.multi_reduction <maximumf>, %73, %cst_24 [1, 2] : vector<1x16x128xf32> to vector<1xf32>
    %75 = vector.shape_cast %74 : vector<1xf32> to vector<1x1x1xf32>
    %76 = vector.extract %75[0, 0, 0] : f32 from vector<1x1x1xf32>
    %77 = vector.broadcast %76 : f32 to vector<16x128xf32>
    %78 = arith.cmpf oge, %72, %77 : vector<16x128xf32>
    %cst_25 = arith.constant 0xFF800000 : f32
    %79 = vector.broadcast %cst_25 : f32 to vector<16x128xf32>
    %80 = arith.select %78, %79, %72 : vector<16x128xi1>, vector<16x128xf32>
    %c9_i32 = arith.constant 9 : i32
    %81 = vector.shape_cast %80 : vector<16x128xf32> to vector<1x16x128xf32>
    %cst_26 = arith.constant dense<0xFF800000> : vector<1xf32>
    %82 = vector.multi_reduction <maximumf>, %81, %cst_26 [1, 2] : vector<1x16x128xf32> to vector<1xf32>
    %83 = vector.shape_cast %82 : vector<1xf32> to vector<1x1x1xf32>
    %84 = vector.extract %83[0, 0, 0] : f32 from vector<1x1x1xf32>
    %85 = vector.broadcast %84 : f32 to vector<16x128xf32>
    %86 = arith.cmpf oge, %80, %85 : vector<16x128xf32>
    %cst_27 = arith.constant 0xFF800000 : f32
    %87 = vector.broadcast %cst_27 : f32 to vector<16x128xf32>
    %88 = arith.select %86, %87, %80 : vector<16x128xi1>, vector<16x128xf32>
    %c10_i32 = arith.constant 10 : i32
    %89 = vector.shape_cast %88 : vector<16x128xf32> to vector<1x16x128xf32>
    %cst_28 = arith.constant dense<0xFF800000> : vector<1xf32>
    %90 = vector.multi_reduction <maximumf>, %89, %cst_28 [1, 2] : vector<1x16x128xf32> to vector<1xf32>
    %91 = vector.shape_cast %90 : vector<1xf32> to vector<1x1x1xf32>
    %92 = vector.extract %91[0, 0, 0] : f32 from vector<1x1x1xf32>
    %93 = vector.broadcast %92 : f32 to vector<16x128xf32>
    %94 = arith.cmpf oge, %88, %93 : vector<16x128xf32>
    %cst_29 = arith.constant 0xFF800000 : f32
    %95 = vector.broadcast %cst_29 : f32 to vector<16x128xf32>
    %96 = arith.select %94, %95, %88 : vector<16x128xi1>, vector<16x128xf32>
    %c11_i32 = arith.constant 11 : i32
    %97 = vector.shape_cast %96 : vector<16x128xf32> to vector<1x16x128xf32>
    %cst_30 = arith.constant dense<0xFF800000> : vector<1xf32>
    %98 = vector.multi_reduction <maximumf>, %97, %cst_30 [1, 2] : vector<1x16x128xf32> to vector<1xf32>
    %99 = vector.shape_cast %98 : vector<1xf32> to vector<1x1x1xf32>
    %100 = vector.extract %99[0, 0, 0] : f32 from vector<1x1x1xf32>
    %101 = vector.broadcast %100 : f32 to vector<16x128xf32>
    %102 = arith.cmpf oge, %96, %101 : vector<16x128xf32>
    %cst_31 = arith.constant 0xFF800000 : f32
    %103 = vector.broadcast %cst_31 : f32 to vector<16x128xf32>
    %104 = arith.select %102, %103, %96 : vector<16x128xi1>, vector<16x128xf32>
    %c12_i32 = arith.constant 12 : i32
    %105 = vector.shape_cast %104 : vector<16x128xf32> to vector<1x16x128xf32>
    %cst_32 = arith.constant dense<0xFF800000> : vector<1xf32>
    %106 = vector.multi_reduction <maximumf>, %105, %cst_32 [1, 2] : vector<1x16x128xf32> to vector<1xf32>
    %107 = vector.shape_cast %106 : vector<1xf32> to vector<1x1x1xf32>
    %108 = vector.extract %107[0, 0, 0] : f32 from vector<1x1x1xf32>
    %109 = vector.broadcast %108 : f32 to vector<16x128xf32>
    %110 = arith.cmpf oge, %104, %109 : vector<16x128xf32>
    %cst_33 = arith.constant 0xFF800000 : f32
    %111 = vector.broadcast %cst_33 : f32 to vector<16x128xf32>
    %112 = arith.select %110, %111, %104 : vector<16x128xi1>, vector<16x128xf32>
    %c13_i32 = arith.constant 13 : i32
    %113 = vector.shape_cast %112 : vector<16x128xf32> to vector<1x16x128xf32>
    %cst_34 = arith.constant dense<0xFF800000> : vector<1xf32>
    %114 = vector.multi_reduction <maximumf>, %113, %cst_34 [1, 2] : vector<1x16x128xf32> to vector<1xf32>
    %115 = vector.shape_cast %114 : vector<1xf32> to vector<1x1x1xf32>
    %116 = vector.extract %115[0, 0, 0] : f32 from vector<1x1x1xf32>
    %117 = vector.broadcast %116 : f32 to vector<16x128xf32>
    %118 = arith.cmpf oge, %112, %117 : vector<16x128xf32>
    %cst_35 = arith.constant 0xFF800000 : f32
    %119 = vector.broadcast %cst_35 : f32 to vector<16x128xf32>
    %120 = arith.select %118, %119, %112 : vector<16x128xi1>, vector<16x128xf32>
    %c14_i32 = arith.constant 14 : i32
    %121 = vector.shape_cast %120 : vector<16x128xf32> to vector<1x16x128xf32>
    %cst_36 = arith.constant dense<0xFF800000> : vector<1xf32>
    %122 = vector.multi_reduction <maximumf>, %121, %cst_36 [1, 2] : vector<1x16x128xf32> to vector<1xf32>
    %123 = vector.shape_cast %122 : vector<1xf32> to vector<1x1x1xf32>
    %124 = vector.extract %123[0, 0, 0] : f32 from vector<1x1x1xf32>
    %125 = vector.broadcast %124 : f32 to vector<16x128xf32>
    %126 = arith.cmpf oge, %120, %125 : vector<16x128xf32>
    %cst_37 = arith.constant 0xFF800000 : f32
    %127 = vector.broadcast %cst_37 : f32 to vector<16x128xf32>
    %128 = arith.select %126, %127, %120 : vector<16x128xi1>, vector<16x128xf32>
    %c15_i32 = arith.constant 15 : i32
    %129 = vector.shape_cast %128 : vector<16x128xf32> to vector<1x16x128xf32>
    %cst_38 = arith.constant dense<0xFF800000> : vector<1xf32>
    %130 = vector.multi_reduction <maximumf>, %129, %cst_38 [1, 2] : vector<1x16x128xf32> to vector<1xf32>
    %131 = vector.shape_cast %130 : vector<1xf32> to vector<1x1x1xf32>
    %132 = vector.extract %131[0, 0, 0] : f32 from vector<1x1x1xf32>
    %133 = vector.broadcast %132 : f32 to vector<16x128xf32>
    %134 = arith.cmpf oge, %128, %133 : vector<16x128xf32>
    %cst_39 = arith.constant 0xFF800000 : f32
    %135 = vector.broadcast %cst_39 : f32 to vector<16x128xf32>
    %136 = arith.select %134, %135, %128 : vector<16x128xi1>, vector<16x128xf32>
    %137 = vector.shape_cast %8 : vector<16x128xf32> to vector<1x16x128xf32>
    %cst_40 = arith.constant dense<0xFF800000> : vector<1xf32>
    %138 = vector.multi_reduction <maximumf>, %137, %cst_40 [1, 2] : vector<1x16x128xf32> to vector<1xf32>
    %139 = vector.shape_cast %138 : vector<1xf32> to vector<1x1x1xf32>
    %140 = vector.extract %139[0, 0, 0] : f32 from vector<1x1x1xf32>
    %141 = vector.broadcast %140 : f32 to vector<16x128xf32>
    %142 = arith.subf %8, %141 : vector<16x128xf32>
    %143 = math.exp %142 : vector<16x128xf32>
    %144 = vector.shape_cast %143 : vector<16x128xf32> to vector<1x16x128xf32>
    %cst_41 = arith.constant dense<0.000000e+00> : vector<1xf32>
    %145 = vector.multi_reduction <add>, %144, %cst_41 [1, 2] : vector<1x16x128xf32> to vector<1xf32>
    %146 = vector.shape_cast %145 : vector<1xf32> to vector<1x1x1xf32>
    %147 = vector.extract %146[0, 0, 0] : f32 from vector<1x1x1xf32>
    %148 = vector.broadcast %147 : f32 to vector<16x128xf32>
    %149 = arith.divf %143, %148 : vector<16x128xf32>
    %150 = vector.broadcast %132 : f32 to vector<16x128xf32>
    %151 = arith.cmpf oge, %8, %150 : vector<16x128xf32>
    %cst_42 = arith.constant 0.000000e+00 : f32
    %152 = vector.broadcast %cst_42 : f32 to vector<16x128xf32>
    %153 = arith.select %151, %149, %152 : vector<16x128xi1>, vector<16x128xf32>
    %154 = arith.mulf %7, %153 : vector<16x128xf32>
    %c0_43 = arith.constant 0 : index
    %c0_44 = arith.constant 0 : index
    %c0_45 = arith.constant 0 : index
    %155 = vector.load %arg4[%c0_43, %c0_44, %c0_45] : memref<2x16x128xf32, #tpu.memory_space<vmem>>, vector<1x16x128xf32>
    %156 = vector.shape_cast %155 : vector<1x16x128xf32> to vector<16x128xf32>
    %157 = vector.shape_cast %154 : vector<16x128xf32> to vector<1x16x128xf32>
    tpu.vector_store %arg4[%c0_43, %c0_44, %c0_45], %157 {strides = array<i32>} : memref<2x16x128xf32, #tpu.memory_space<vmem>>, vector<1x16x128xf32>,
    %c1 = arith.constant 1 : index
    %c0_46 = arith.constant 0 : index
    %c0_47 = arith.constant 0 : index
    %158 = vector.load %arg1[%c1, %c0_46, %c0_47] : memref<2x9x128xf32, #tpu.memory_space<vmem>>, vector<1x9x128xf32>
    %159 = vector.shape_cast %158 : vector<1x9x128xf32> to vector<9x128xf32>
    %c1_48 = arith.constant 1 : index
    %c0_49 = arith.constant 0 : index
    %c0_50 = arith.constant 0 : index
    %160 = vector.load %arg2[%c1_48, %c0_49, %c0_50] : memref<2x9x128xf32, #tpu.memory_space<vmem>>, vector<1x9x128xf32>
    %161 = vector.shape_cast %160 : vector<1x9x128xf32> to vector<9x128xf32>
    %162 = arith.mulf %159, %161 : vector<9x128xf32>
    %cst_51 = arith.constant dense<0.000000e+00> : vector<32x128xf32>
    %163 = tpu.matmul %0, %162, %cst_51 {dimension_numbers = #tpu.dot_dimension_numbers<[1], [0], [0], [1], [0, 0, 1, 1], [], []>} : vector<32x9xf32>, vector<9x128xf32>, vector<32x128xf32> -> vector<32x128xf32>
    %164 = vector.extract_strided_slice %163 {offsets = [0, 0], sizes = [16, 128], strides = [1, 1]} : vector<32x128xf32> to vector<16x128xf32>
    %165 = vector.extract_strided_slice %163 {offsets = [16, 0], sizes = [16, 128], strides = [1, 1]} : vector<32x128xf32> to vector<16x128xf32>
    %cst_52 = arith.constant 0xFF800000 : f32
    %c0_i32_53 = arith.constant 0 : i32
    %166 = vector.shape_cast %165 : vector<16x128xf32> to vector<1x16x128xf32>
    %cst_54 = arith.constant dense<0xFF800000> : vector<1xf32>
    %167 = vector.multi_reduction <maximumf>, %166, %cst_54 [1, 2] : vector<1x16x128xf32> to vector<1xf32>
    %168 = vector.shape_cast %167 : vector<1xf32> to vector<1x1x1xf32>
    %169 = vector.extract %168[0, 0, 0] : f32 from vector<1x1x1xf32>
    %170 = vector.broadcast %169 : f32 to vector<16x128xf32>
    %171 = arith.cmpf oge, %165, %170 : vector<16x128xf32>
    %cst_55 = arith.constant 0xFF800000 : f32
    %172 = vector.broadcast %cst_55 : f32 to vector<16x128xf32>
    %173 = arith.select %171, %172, %165 : vector<16x128xi1>, vector<16x128xf32>
    %c1_i32_56 = arith.constant 1 : i32
    %174 = vector.shape_cast %173 : vector<16x128xf32> to vector<1x16x128xf32>
    %cst_57 = arith.constant dense<0xFF800000> : vector<1xf32>
    %175 = vector.multi_reduction <maximumf>, %174, %cst_57 [1, 2] : vector<1x16x128xf32> to vector<1xf32>
    %176 = vector.shape_cast %175 : vector<1xf32> to vector<1x1x1xf32>
    %177 = vector.extract %176[0, 0, 0] : f32 from vector<1x1x1xf32>
    %178 = vector.broadcast %177 : f32 to vector<16x128xf32>
    %179 = arith.cmpf oge, %173, %178 : vector<16x128xf32>
    %cst_58 = arith.constant 0xFF800000 : f32
    %180 = vector.broadcast %cst_58 : f32 to vector<16x128xf32>
    %181 = arith.select %179, %180, %173 : vector<16x128xi1>, vector<16x128xf32>
    %c2_i32_59 = arith.constant 2 : i32
    %182 = vector.shape_cast %181 : vector<16x128xf32> to vector<1x16x128xf32>
    %cst_60 = arith.constant dense<0xFF800000> : vector<1xf32>
    %183 = vector.multi_reduction <maximumf>, %182, %cst_60 [1, 2] : vector<1x16x128xf32> to vector<1xf32>
    %184 = vector.shape_cast %183 : vector<1xf32> to vector<1x1x1xf32>
    %185 = vector.extract %184[0, 0, 0] : f32 from vector<1x1x1xf32>
    %186 = vector.broadcast %185 : f32 to vector<16x128xf32>
    %187 = arith.cmpf oge, %181, %186 : vector<16x128xf32>
    %cst_61 = arith.constant 0xFF800000 : f32
    %188 = vector.broadcast %cst_61 : f32 to vector<16x128xf32>
    %189 = arith.select %187, %188, %181 : vector<16x128xi1>, vector<16x128xf32>
    %c3_i32_62 = arith.constant 3 : i32
    %190 = vector.shape_cast %189 : vector<16x128xf32> to vector<1x16x128xf32>
    %cst_63 = arith.constant dense<0xFF800000> : vector<1xf32>
    %191 = vector.multi_reduction <maximumf>, %190, %cst_63 [1, 2] : vector<1x16x128xf32> to vector<1xf32>
    %192 = vector.shape_cast %191 : vector<1xf32> to vector<1x1x1xf32>
    %193 = vector.extract %192[0, 0, 0] : f32 from vector<1x1x1xf32>
    %194 = vector.broadcast %193 : f32 to vector<16x128xf32>
    %195 = arith.cmpf oge, %189, %194 : vector<16x128xf32>
    %cst_64 = arith.constant 0xFF800000 : f32
    %196 = vector.broadcast %cst_64 : f32 to vector<16x128xf32>
    %197 = arith.select %195, %196, %189 : vector<16x128xi1>, vector<16x128xf32>
    %c4_i32_65 = arith.constant 4 : i32
    %198 = vector.shape_cast %197 : vector<16x128xf32> to vector<1x16x128xf32>
    %cst_66 = arith.constant dense<0xFF800000> : vector<1xf32>
    %199 = vector.multi_reduction <maximumf>, %198, %cst_66 [1, 2] : vector<1x16x128xf32> to vector<1xf32>
    %200 = vector.shape_cast %199 : vector<1xf32> to vector<1x1x1xf32>
    %201 = vector.extract %200[0, 0, 0] : f32 from vector<1x1x1xf32>
    %202 = vector.broadcast %201 : f32 to vector<16x128xf32>
    %203 = arith.cmpf oge, %197, %202 : vector<16x128xf32>
    %cst_67 = arith.constant 0xFF800000 : f32
    %204 = vector.broadcast %cst_67 : f32 to vector<16x128xf32>
    %205 = arith.select %203, %204, %197 : vector<16x128xi1>, vector<16x128xf32>
    %c5_i32_68 = arith.constant 5 : i32
    %206 = vector.shape_cast %205 : vector<16x128xf32> to vector<1x16x128xf32>
    %cst_69 = arith.constant dense<0xFF800000> : vector<1xf32>
    %207 = vector.multi_reduction <maximumf>, %206, %cst_69 [1, 2] : vector<1x16x128xf32> to vector<1xf32>
    %208 = vector.shape_cast %207 : vector<1xf32> to vector<1x1x1xf32>
    %209 = vector.extract %208[0, 0, 0] : f32 from vector<1x1x1xf32>
    %210 = vector.broadcast %209 : f32 to vector<16x128xf32>
    %211 = arith.cmpf oge, %205, %210 : vector<16x128xf32>
    %cst_70 = arith.constant 0xFF800000 : f32
    %212 = vector.broadcast %cst_70 : f32 to vector<16x128xf32>
    %213 = arith.select %211, %212, %205 : vector<16x128xi1>, vector<16x128xf32>
    %c6_i32_71 = arith.constant 6 : i32
    %214 = vector.shape_cast %213 : vector<16x128xf32> to vector<1x16x128xf32>
    %cst_72 = arith.constant dense<0xFF800000> : vector<1xf32>
    %215 = vector.multi_reduction <maximumf>, %214, %cst_72 [1, 2] : vector<1x16x128xf32> to vector<1xf32>
    %216 = vector.shape_cast %215 : vector<1xf32> to vector<1x1x1xf32>
    %217 = vector.extract %216[0, 0, 0] : f32 from vector<1x1x1xf32>
    %218 = vector.broadcast %217 : f32 to vector<16x128xf32>
    %219 = arith.cmpf oge, %213, %218 : vector<16x128xf32>
    %cst_73 = arith.constant 0xFF800000 : f32
    %220 = vector.broadcast %cst_73 : f32 to vector<16x128xf32>
    %221 = arith.select %219, %220, %213 : vector<16x128xi1>, vector<16x128xf32>
    %c7_i32_74 = arith.constant 7 : i32
    %222 = vector.shape_cast %221 : vector<16x128xf32> to vector<1x16x128xf32>
    %cst_75 = arith.constant dense<0xFF800000> : vector<1xf32>
    %223 = vector.multi_reduction <maximumf>, %222, %cst_75 [1, 2] : vector<1x16x128xf32> to vector<1xf32>
    %224 = vector.shape_cast %223 : vector<1xf32> to vector<1x1x1xf32>
    %225 = vector.extract %224[0, 0, 0] : f32 from vector<1x1x1xf32>
    %226 = vector.broadcast %225 : f32 to vector<16x128xf32>
    %227 = arith.cmpf oge, %221, %226 : vector<16x128xf32>
    %cst_76 = arith.constant 0xFF800000 : f32
    %228 = vector.broadcast %cst_76 : f32 to vector<16x128xf32>
    %229 = arith.select %227, %228, %221 : vector<16x128xi1>, vector<16x128xf32>
    %c8_i32_77 = arith.constant 8 : i32
    %230 = vector.shape_cast %229 : vector<16x128xf32> to vector<1x16x128xf32>
    %cst_78 = arith.constant dense<0xFF800000> : vector<1xf32>
    %231 = vector.multi_reduction <maximumf>, %230, %cst_78 [1, 2] : vector<1x16x128xf32> to vector<1xf32>
    %232 = vector.shape_cast %231 : vector<1xf32> to vector<1x1x1xf32>
    %233 = vector.extract %232[0, 0, 0] : f32 from vector<1x1x1xf32>
    %234 = vector.broadcast %233 : f32 to vector<16x128xf32>
    %235 = arith.cmpf oge, %229, %234 : vector<16x128xf32>
    %cst_79 = arith.constant 0xFF800000 : f32
    %236 = vector.broadcast %cst_79 : f32 to vector<16x128xf32>
    %237 = arith.select %235, %236, %229 : vector<16x128xi1>, vector<16x128xf32>
    %c9_i32_80 = arith.constant 9 : i32
    %238 = vector.shape_cast %237 : vector<16x128xf32> to vector<1x16x128xf32>
    %cst_81 = arith.constant dense<0xFF800000> : vector<1xf32>
    %239 = vector.multi_reduction <maximumf>, %238, %cst_81 [1, 2] : vector<1x16x128xf32> to vector<1xf32>
    %240 = vector.shape_cast %239 : vector<1xf32> to vector<1x1x1xf32>
    %241 = vector.extract %240[0, 0, 0] : f32 from vector<1x1x1xf32>
    %242 = vector.broadcast %241 : f32 to vector<16x128xf32>
    %243 = arith.cmpf oge, %237, %242 : vector<16x128xf32>
    %cst_82 = arith.constant 0xFF800000 : f32
    %244 = vector.broadcast %cst_82 : f32 to vector<16x128xf32>
    %245 = arith.select %243, %244, %237 : vector<16x128xi1>, vector<16x128xf32>
    %c10_i32_83 = arith.constant 10 : i32
    %246 = vector.shape_cast %245 : vector<16x128xf32> to vector<1x16x128xf32>
    %cst_84 = arith.constant dense<0xFF800000> : vector<1xf32>
    %247 = vector.multi_reduction <maximumf>, %246, %cst_84 [1, 2] : vector<1x16x128xf32> to vector<1xf32>
    %248 = vector.shape_cast %247 : vector<1xf32> to vector<1x1x1xf32>
    %249 = vector.extract %248[0, 0, 0] : f32 from vector<1x1x1xf32>
    %250 = vector.broadcast %249 : f32 to vector<16x128xf32>
    %251 = arith.cmpf oge, %245, %250 : vector<16x128xf32>
    %cst_85 = arith.constant 0xFF800000 : f32
    %252 = vector.broadcast %cst_85 : f32 to vector<16x128xf32>
    %253 = arith.select %251, %252, %245 : vector<16x128xi1>, vector<16x128xf32>
    %c11_i32_86 = arith.constant 11 : i32
    %254 = vector.shape_cast %253 : vector<16x128xf32> to vector<1x16x128xf32>
    %cst_87 = arith.constant dense<0xFF800000> : vector<1xf32>
    %255 = vector.multi_reduction <maximumf>, %254, %cst_87 [1, 2] : vector<1x16x128xf32> to vector<1xf32>
    %256 = vector.shape_cast %255 : vector<1xf32> to vector<1x1x1xf32>
    %257 = vector.extract %256[0, 0, 0] : f32 from vector<1x1x1xf32>
    %258 = vector.broadcast %257 : f32 to vector<16x128xf32>
    %259 = arith.cmpf oge, %253, %258 : vector<16x128xf32>
    %cst_88 = arith.constant 0xFF800000 : f32
    %260 = vector.broadcast %cst_88 : f32 to vector<16x128xf32>
    %261 = arith.select %259, %260, %253 : vector<16x128xi1>, vector<16x128xf32>
    %c12_i32_89 = arith.constant 12 : i32
    %262 = vector.shape_cast %261 : vector<16x128xf32> to vector<1x16x128xf32>
    %cst_90 = arith.constant dense<0xFF800000> : vector<1xf32>
    %263 = vector.multi_reduction <maximumf>, %262, %cst_90 [1, 2] : vector<1x16x128xf32> to vector<1xf32>
    %264 = vector.shape_cast %263 : vector<1xf32> to vector<1x1x1xf32>
    %265 = vector.extract %264[0, 0, 0] : f32 from vector<1x1x1xf32>
    %266 = vector.broadcast %265 : f32 to vector<16x128xf32>
    %267 = arith.cmpf oge, %261, %266 : vector<16x128xf32>
    %cst_91 = arith.constant 0xFF800000 : f32
    %268 = vector.broadcast %cst_91 : f32 to vector<16x128xf32>
    %269 = arith.select %267, %268, %261 : vector<16x128xi1>, vector<16x128xf32>
    %c13_i32_92 = arith.constant 13 : i32
    %270 = vector.shape_cast %269 : vector<16x128xf32> to vector<1x16x128xf32>
    %cst_93 = arith.constant dense<0xFF800000> : vector<1xf32>
    %271 = vector.multi_reduction <maximumf>, %270, %cst_93 [1, 2] : vector<1x16x128xf32> to vector<1xf32>
    %272 = vector.shape_cast %271 : vector<1xf32> to vector<1x1x1xf32>
    %273 = vector.extract %272[0, 0, 0] : f32 from vector<1x1x1xf32>
    %274 = vector.broadcast %273 : f32 to vector<16x128xf32>
    %275 = arith.cmpf oge, %269, %274 : vector<16x128xf32>
    %cst_94 = arith.constant 0xFF800000 : f32
    %276 = vector.broadcast %cst_94 : f32 to vector<16x128xf32>
    %277 = arith.select %275, %276, %269 : vector<16x128xi1>, vector<16x128xf32>
    %c14_i32_95 = arith.constant 14 : i32
    %278 = vector.shape_cast %277 : vector<16x128xf32> to vector<1x16x128xf32>
    %cst_96 = arith.constant dense<0xFF800000> : vector<1xf32>
    %279 = vector.multi_reduction <maximumf>, %278, %cst_96 [1, 2] : vector<1x16x128xf32> to vector<1xf32>
    %280 = vector.shape_cast %279 : vector<1xf32> to vector<1x1x1xf32>
    %281 = vector.extract %280[0, 0, 0] : f32 from vector<1x1x1xf32>
    %282 = vector.broadcast %281 : f32 to vector<16x128xf32>
    %283 = arith.cmpf oge, %277, %282 : vector<16x128xf32>
    %cst_97 = arith.constant 0xFF800000 : f32
    %284 = vector.broadcast %cst_97 : f32 to vector<16x128xf32>
    %285 = arith.select %283, %284, %277 : vector<16x128xi1>, vector<16x128xf32>
    %c15_i32_98 = arith.constant 15 : i32
    %286 = vector.shape_cast %285 : vector<16x128xf32> to vector<1x16x128xf32>
    %cst_99 = arith.constant dense<0xFF800000> : vector<1xf32>
    %287 = vector.multi_reduction <maximumf>, %286, %cst_99 [1, 2] : vector<1x16x128xf32> to vector<1xf32>
    %288 = vector.shape_cast %287 : vector<1xf32> to vector<1x1x1xf32>
    %289 = vector.extract %288[0, 0, 0] : f32 from vector<1x1x1xf32>
    %290 = vector.broadcast %289 : f32 to vector<16x128xf32>
    %291 = arith.cmpf oge, %285, %290 : vector<16x128xf32>
    %cst_100 = arith.constant 0xFF800000 : f32
    %292 = vector.broadcast %cst_100 : f32 to vector<16x128xf32>
    %293 = arith.select %291, %292, %285 : vector<16x128xi1>, vector<16x128xf32>
    %294 = vector.shape_cast %165 : vector<16x128xf32> to vector<1x16x128xf32>
    %cst_101 = arith.constant dense<0xFF800000> : vector<1xf32>
    %295 = vector.multi_reduction <maximumf>, %294, %cst_101 [1, 2] : vector<1x16x128xf32> to vector<1xf32>
    %296 = vector.shape_cast %295 : vector<1xf32> to vector<1x1x1xf32>
    %297 = vector.extract %296[0, 0, 0] : f32 from vector<1x1x1xf32>
    %298 = vector.broadcast %297 : f32 to vector<16x128xf32>
    %299 = arith.subf %165, %298 : vector<16x128xf32>
    %300 = math.exp %299 : vector<16x128xf32>
    %301 = vector.shape_cast %300 : vector<16x128xf32> to vector<1x16x128xf32>
    %cst_102 = arith.constant dense<0.000000e+00> : vector<1xf32>
    %302 = vector.multi_reduction <add>, %301, %cst_102 [1, 2] : vector<1x16x128xf32> to vector<1xf32>
    %303 = vector.shape_cast %302 : vector<1xf32> to vector<1x1x1xf32>
    %304 = vector.extract %303[0, 0, 0] : f32 from vector<1x1x1xf32>
    %305 = vector.broadcast %304 : f32 to vector<16x128xf32>
    %306 = arith.divf %300, %305 : vector<16x128xf32>
    %307 = vector.broadcast %289 : f32 to vector<16x128xf32>
    %308 = arith.cmpf oge, %165, %307 : vector<16x128xf32>
    %cst_103 = arith.constant 0.000000e+00 : f32
    %309 = vector.broadcast %cst_103 : f32 to vector<16x128xf32>
    %310 = arith.select %308, %306, %309 : vector<16x128xi1>, vector<16x128xf32>
    %311 = arith.mulf %164, %310 : vector<16x128xf32>
    %c1_104 = arith.constant 1 : index
    %c0_105 = arith.constant 0 : index
    %c0_106 = arith.constant 0 : index
    %312 = vector.load %arg4[%c1_104, %c0_105, %c0_106] : memref<2x16x128xf32, #tpu.memory_space<vmem>>, vector<1x16x128xf32>
    %313 = vector.shape_cast %312 : vector<1x16x128xf32> to vector<16x128xf32>
    %314 = vector.shape_cast %311 : vector<16x128xf32> to vector<1x16x128xf32>
    tpu.vector_store %arg4[%c1_104, %c0_105, %c0_106], %314 {strides = array<i32>} : memref<2x16x128xf32, #tpu.memory_space<vmem>>, vector<1x16x128xf32>,
    return
  }
  func.func @transform_0(%arg0: i32) -> (i32, i32, i32) {
    %c0_i32 = arith.constant 0 : i32
    %c0_i32_0 = arith.constant 0 : i32
    %c0_i32_1 = arith.constant 0 : i32
    %c0_i32_2 = arith.constant 0 : i32
    return %c0_i32, %c0_i32_0, %c0_i32_1 : i32, i32, i32
  }
  func.func @transform_1(%arg0: i32) -> (i32, i32, i32) {
    %c0_i32 = arith.constant 0 : i32
    %c0_i32_0 = arith.constant 0 : i32
    %c0_i32_1 = arith.constant 0 : i32
    %c0_i32_2 = arith.constant 0 : i32
    return %c0_i32, %c0_i32_0, %c0_i32_1 : i32, i32, i32
  }
  func.func @transform_2(%arg0: i32) -> (i32, i32) {
    %c0_i32 = arith.constant 0 : i32
    %c0_i32_0 = arith.constant 0 : i32
    %c0_i32_1 = arith.constant 0 : i32
    return %c0_i32, %c0_i32_0 : i32, i32
  }
  func.func @transform_3(%arg0: i32) -> (i32, i32, i32) {
    %c0_i32 = arith.constant 0 : i32
    %c0_i32_0 = arith.constant 0 : i32
    %c0_i32_1 = arith.constant 0 : i32
    %c0_i32_2 = arith.constant 0 : i32
    return %c0_i32, %c0_i32_0, %c0_i32_1 : i32, i32, i32
  }
}

</mosaic_0001>

<bundles_post_ra>
// kernel: tpu_custom_call.1
= control target key start
LH: loop header
LB: loop body
LE: loop exit
PB: predicated region body
PF: predicated region fallthrough
CT: control target
= control target key end

     0   :  { %vm38_vm0 = vcmask 1040384   ;;  %s952_s0 = inlined_call_operand.vmem [shape: f32[2,9,128], index: 0, kind: input, shape index: {}]   ;;  %s953_s1 = inlined_call_operand.vmem [shape: f32[2,9,128], index: 1, kind: input, shape index: {}]   ;;  %s954_s2 = inlined_call_operand.vmem [shape: f32[32,9], index: 2, kind: input, shape index: {}]   ;;  %s955_s3 = inlined_call_operand.hbm [shape: f32[2,16,128], index: 3, kind: output, shape index: {}]  }
   0x1   :  { %v20_v0 = vld [vmem:[%s952_s0 + $0x8] sm:$0x1]  ;;  %v19_v2 = vld [vmem:[%s952_s0] sm:$0xff] }
   0x2   :  { %v22_v1 = vld [vmem:[%s953_s1 + $0x8] sm:$0x1]  ;;  %v21_v4 = vld [vmem:[%s953_s1] sm:$0xff] }
   0x3   :  { %v24_v3 = vmul.f32 %v22_v1, %v20_v0  ;;  %v23_v5 = vmul.f32 %v21_v4, %v19_v2 }
   0x4   :  { %8 = vsyncpa [#allocation3], 0  ;;  %v850_v6 = vld [vmem:[%s954_s2 + $0x10] sm:$0xff]  ;;  %vm25_vm1 = vcmask 72704   ;;  %v858_v7 = vld [vmem:[%s954_s2 + $0x18] sm:$0xff]  ;;  %s811_s13 = smov [#allocation2]  }
   0x5   :  { %698 = vmatpush.msk.msra.mxu2 %vm38_vm0, %v24_v3  ;;  %684 = vmatpush.msk.msra.mxu0 %vm38_vm0, %v24_v3  ;;  %s670_s14 = sshll.u32 %s811_s13, 4  ;;  %s672_s17 = sshll.u32 %s955_s3, 4  ;;  %s671_s14 = int_to_ptr.vmem [resolvable:$true] %s670_s14  ;;  %s673_s17 = int_to_ptr.hbm [resolvable:$true] %s672_s17 }
   0x7   :  { %699 = vmatpush.msra.mxu2 %v23_v5  ;;  %57 = vmatpush.msra.mxu0 %v23_v5 }
   0x8   :  { %687 = vmatmul.msk.f32.vlgmr.msra.gmra.mxu2 %vm25_vm1, %v850_v6 }
  0x10   :  { %688 = vmatmul.msk.f32.gmra.mxu2 %vm25_vm1, %v858_v7 }
  0x8b   :  { %v862_v8 = vpop.f32.mrf.mxu2 }
  0x93   :  { %v864_v9 = vpop.f32.mrf.mxu2 }
  0x94   :  { %v71_v10 = vmax.f32 %v862_v8, %v864_v9 }
  0x96   :  { %72 = vmax.xlane.f32.xlu0 %v71_v10 }
 0x109   :  { %v73_v11 = vpop.xlane.xlu0 %72 }
 0x10a   :  { %v74_v12 = vrot.slane %v73_v11, 4 }
 0x10c   :  { %v75_v13 = vmax.f32 %v73_v11, %v74_v12 }
 0x10e   :  { %v76_v14 = vrot.slane %v75_v13, 2 }
 0x110   :  { %v77_v15 = vmax.f32 %v75_v13, %v76_v14 }
 0x112   :  { %v78_v16 = vrot.slane %v77_v15, 1 }
 0x114   :  { %v79_v17 = vmax.f32 %v77_v15, %v78_v16 }
 0x116   :  { %702 = vpush %v79_v17 }
 0x147   :  { %s703_s24 = spop %702 }
 0x148   :  { %v868_v18 = vstv %s703_s24 }
 0x149   :  { %vm82_vm2 = vcmp.ge.f32.partialorder %v862_v8, %v868_v18  ;;  %vm83_vm3 = vcmp.ge.f32.partialorder %v864_v9, %v868_v18 }
 0x14a   :  { %v84_v19 = vsel %vm82_vm2, -inf, %v862_v8  ;;  %v85_v20 = vsel %vm83_vm3, -inf, %v864_v9 }
 0x14b   :  { %v86_v21 = vmax.f32 %v84_v19, %v85_v20 }
 0x14d   :  { %87 = vmax.xlane.f32.xlu0 %v86_v21 }
 0x1c0   :  { %v88_v22 = vpop.xlane.xlu0 %87 }
 0x1c1   :  { %v89_v23 = vrot.slane %v88_v22, 4 }
 0x1c3   :  { %v90_v24 = vmax.f32 %v88_v22, %v89_v23 }
 0x1c5   :  { %v91_v25 = vrot.slane %v90_v24, 2 }
 0x1c7   :  { %v92_v26 = vmax.f32 %v90_v24, %v91_v25 }
 0x1c9   :  { %v93_v27 = vrot.slane %v92_v26, 1 }
 0x1cb   :  { %v94_v28 = vmax.f32 %v92_v26, %v93_v27 }
 0x1cd   :  { %704 = vpush %v94_v28 }
 0x1fe   :  { %s705_s25 = spop %704 }
 0x1ff   :  { %v96_v29 = vstv %s705_s25 }
 0x200   :  { %vm97_vm4 = vcmp.ge.f32.partialorder %v84_v19, %v96_v29  ;;  %vm98_vm5 = vcmp.ge.f32.partialorder %v85_v20, %v96_v29 }
 0x201   :  { %v99_v30 = vsel %vm97_vm4, -inf, %v84_v19  ;;  %v100_v31 = vsel %vm98_vm5, -inf, %v85_v20 }
 0x202   :  { %v101_v32 = vmax.f32 %v99_v30, %v100_v31 }
 0x204   :  { %102 = vmax.xlane.f32.xlu1 %v101_v32 }
 0x277   :  { %v103_v33 = vpop.xlane.xlu1 %102 }
 0x278   :  { %v104_v34 = vrot.slane %v103_v33, 4 }
 0x27a   :  { %v105_v35 = vmax.f32 %v103_v33, %v104_v34 }
 0x27c   :  { %v106_v36 = vrot.slane %v105_v35, 2 }
 0x27e   :  { %v107_v37 = vmax.f32 %v105_v35, %v106_v36 }
 0x280   :  { %v108_v38 = vrot.slane %v107_v37, 1 }
 0x282   :  { %v109_v39 = vmax.f32 %v107_v37, %v108_v38 }
 0x284   :  { %706 = vpush %v109_v39 }
 0x2b5   :  { %s707_s26 = spop %706 }
 0x2b6   :  { %v111_v40 = vstv %s707_s26 }
 0x2b7   :  { %vm112_vm6 = vcmp.ge.f32.partialorder %v99_v30, %v111_v40  ;;  %vm113_vm7 = vcmp.ge.f32.partialorder %v100_v31, %v111_v40 }
 0x2b8   :  { %v114_v41 = vsel %vm112_vm6, -inf, %v99_v30  ;;  %v115_v42 = vsel %vm113_vm7, -inf, %v100_v31 }
 0x2b9   :  { %v116_v43 = vmax.f32 %v114_v41, %v115_v42 }
 0x2bb   :  { %117 = vmax.xlane.f32.xlu1 %v116_v43 }
 0x32e   :  { %v118_v44 = vpop.xlane.xlu1 %117 }
 0x32f   :  { %v119_v45 = vrot.slane %v118_v44, 4 }
 0x331   :  { %v120_v46 = vmax.f32 %v118_v44, %v119_v45 }
 0x333   :  { %v121_v47 = vrot.slane %v120_v46, 2 }
 0x335   :  { %v122_v48 = vmax.f32 %v120_v46, %v121_v47 }
 0x337   :  { %v123_v49 = vrot.slane %v122_v48, 1 }
 0x339   :  { %v124_v50 = vmax.f32 %v122_v48, %v123_v49 }
 0x33b   :  { %708 = vpush %v124_v50 }
 0x36c   :  { %s709_s27 = spop %708 }
 0x36d   :  { %v126_v51 = vstv %s709_s27 }
 0x36e   :  { %vm127_vm8 = vcmp.ge.f32.partialorder %v114_v41, %v126_v51  ;;  %vm128_vm9 = vcmp.ge.f32.partialorder %v115_v42, %v126_v51 }
 0x36f   :  { %v129_v52 = vsel %vm127_vm8, -inf, %v114_v41  ;;  %v130_v53 = vsel %vm128_vm9, -inf, %v115_v42 }
 0x370   :  { %v131_v54 = vmax.f32 %v129_v52, %v130_v53 }
 0x372   :  { %132 = vmax.xlane.f32.xlu2 %v131_v54 }
 0x3e5   :  { %v133_v55 = vpop.xlane.xlu2 %132 }
 0x3e6   :  { %v134_v56 = vrot.slane %v133_v55, 4 }
 0x3e8   :  { %v135_v57 = vmax.f32 %v133_v55, %v134_v56 }
 0x3ea   :  { %v136_v58 = vrot.slane %v135_v57, 2 }
 0x3ec   :  { %v137_v59 = vmax.f32 %v135_v57, %v136_v58 }
 0x3ee   :  { %v138_v60 = vrot.slane %v137_v59, 1 }
 0x3f0   :  { %v139_v61 = vmax.f32 %v137_v59, %v138_v60 }
 0x3f2   :  { %710 = vpush %v139_v61 }
 0x423   :  { %s711_s28 = spop %710 }
 0x424   :  { %v141_v62 = vstv %s711_s28 }
 0x425   :  { %vm142_vm10 = vcmp.ge.f32.partialorder %v129_v52, %v141_v62  ;;  %vm143_vm11 = vcmp.ge.f32.partialorder %v130_v53, %v141_v62 }
 0x426   :  { %v144_v63 = vsel %vm142_vm10, -inf, %v129_v52  ;;  %v145_v0 = vsel %vm143_vm11, -inf, %v130_v53 }
 0x427   :  { %v146_v1 = vmax.f32 %v144_v63, %v145_v0 }
 0x429   :  { %147 = vmax.xlane.f32.xlu2 %v146_v1 }
 0x49c   :  { %v148_v2 = vpop.xlane.xlu2 %147 }
 0x49d   :  { %v149_v3 = vrot.slane %v148_v2, 4 }
 0x49f   :  { %v150_v4 = vmax.f32 %v148_v2, %v149_v3 }
 0x4a1   :  { %v151_v5 = vrot.slane %v150_v4, 2 }
 0x4a3   :  { %v152_v10 = vmax.f32 %v150_v4, %v151_v5 }
 0x4a5   :  { %v153_v11 = vrot.slane %v152_v10, 1 }
 0x4a7   :  { %v154_v12 = vmax.f32 %v152_v10, %v153_v11 }
 0x4a9   :  { %712 = vpush %v154_v12 }
 0x4da   :  { %s713_s29 = spop %712 }
 0x4db   :  { %v156_v13 = vstv %s713_s29 }
 0x4dc   :  { %vm157_vm12 = vcmp.ge.f32.partialorder %v144_v63, %v156_v13  ;;  %vm158_vm13 = vcmp.ge.f32.partialorder %v145_v0, %v156_v13 }
 0x4dd   :  { %v159_v14 = vsel %vm157_vm12, -inf, %v144_v63  ;;  %v160_v15 = vsel %vm158_vm13, -inf, %v145_v0 }
 0x4de   :  { %v161_v16 = vmax.f32 %v159_v14, %v160_v15 }
 0x4e0   :  { %162 = vmax.xlane.f32.xlu0 %v161_v16 }
 0x553   :  { %v163_v17 = vpop.xlane.xlu0 %162 }
 0x554   :  { %v164_v19 = vrot.slane %v163_v17, 4 }
 0x556   :  { %v165_v20 = vmax.f32 %v163_v17, %v164_v19 }
 0x558   :  { %v166_v21 = vrot.slane %v165_v20, 2 }
 0x55a   :  { %v167_v22 = vmax.f32 %v165_v20, %v166_v21 }
 0x55c   :  { %v168_v23 = vrot.slane %v167_v22, 1 }
 0x55e   :  { %v169_v24 = vmax.f32 %v167_v22, %v168_v23 }
 0x560   :  { %714 = vpush %v169_v24 }
 0x591   :  { %s715_s30 = spop %714 }
 0x592   :  { %v171_v25 = vstv %s715_s30 }
 0x593   :  { %vm172_vm14 = vcmp.ge.f32.partialorder %v159_v14, %v171_v25  ;;  %vm173_vm15 = vcmp.ge.f32.partialorder %v160_v15, %v171_v25 }
 0x594   :  { %v174_v26 = vsel %vm172_vm14, -inf, %v159_v14  ;;  %v175_v27 = vsel %vm173_vm15, -inf, %v160_v15 }
 0x595   :  { %v176_v28 = vmax.f32 %v174_v26, %v175_v27 }
 0x597   :  { %177 = vmax.xlane.f32.xlu1 %v176_v28 }
 0x60a   :  { %v178_v29 = vpop.xlane.xlu1 %177 }
 0x60b   :  { %v179_v30 = vrot.slane %v178_v29, 4 }
 0x60d   :  { %v180_v31 = vmax.f32 %v178_v29, %v179_v30 }
 0x60f   :  { %v181_v32 = vrot.slane %v180_v31, 2 }
 0x611   :  { %v182_v33 = vmax.f32 %v180_v31, %v181_v32  ;;  %v306_v32 = vsub.f32 %v862_v8, %v868_v18 }
 0x613   :  { %v183_v34 = vrot.slane %v182_v33, 1 }
 0x615   :  { %v184_v35 = vmax.f32 %v182_v33, %v183_v34  ;;  %v307_v33 = vsub.f32 %v864_v9, %v868_v18  ;;  %v308_v34 = vmul.f32 1.442695, %v306_v32 }
 0x617   :  { %716 = vpush %v184_v35  ;;  %v310_v35 = vmul.f32 1.442695, %v307_v33  ;;  %773 = vpow2.f32 %v308_v34 }
 0x619   :  { %775 = vpow2.f32 %v310_v35 }
 0x648   :  { %s717_s4 = spop %716 }
 0x649   :  { %v186_v36 = vstv %s717_s4 }
 0x64a   :  { %vm187_vm2 = vcmp.ge.f32.partialorder %v174_v26, %v186_v36  ;;  %vm188_vm3 = vcmp.ge.f32.partialorder %v175_v27, %v186_v36 }
 0x64b   :  { %v189_v37 = vsel %vm187_vm2, -inf, %v174_v26  ;;  %v190_v38 = vsel %vm188_vm3, -inf, %v175_v27 }
 0x64c   :  { %v191_v39 = vmax.f32 %v189_v37, %v190_v38 }
 0x64e   :  { %192 = vmax.xlane.f32.xlu2 %v191_v39 }
 0x6c1   :  { %v193_v40 = vpop.xlane.xlu2 %192 }
 0x6c2   :  { %v194_v41 = vrot.slane %v193_v40, 4 }
 0x6c4   :  { %v195_v42 = vmax.f32 %v193_v40, %v194_v41  ;;  %v880_v40 = vpop.eup %773 }
 0x6c5   :  { %v882_v41 = vpop.eup %775 }
 0x6c6   :  { %v196_v43 = vrot.slane %v195_v42, 2 }
 0x6c8   :  { %v197_v44 = vmax.f32 %v195_v42, %v196_v43  ;;  %v312_v42 = vadd.f32 %v882_v41, %v880_v40 }
 0x6ca   :  { %v198_v45 = vrot.slane %v197_v44, 1 }
 0x6cc   :  { %v199_v46 = vmax.f32 %v197_v44, %v198_v45 }
 0x6ce   :  { %718 = vpush %v199_v46 }
 0x6ff   :  { %s719_s5 = spop %718 }
 0x700   :  { %v201_v47 = vstv %s719_s5 }
 0x701   :  { %vm202_vm4 = vcmp.ge.f32.partialorder %v189_v37, %v201_v47  ;;  %vm203_vm5 = vcmp.ge.f32.partialorder %v190_v38, %v201_v47 }
 0x702   :  { %v204_v48 = vsel %vm202_vm4, -inf, %v189_v37  ;;  %v205_v49 = vsel %vm203_vm5, -inf, %v190_v38 }
 0x703   :  { %v206_v50 = vmax.f32 %v204_v48, %v205_v49 }
 0x705   :  { %207 = vmax.xlane.f32.xlu0 %v206_v50  ;;  %v692_v50 = vld [vmem:[%s953_s1 + $0x18] sm:$0x1] }
 0x778   :  { %v208_v51 = vpop.xlane.xlu0 %207 }
 0x779   :  { %v209_v52 = vrot.slane %v208_v51, 4 }
 0x77b   :  { %v210_v53 = vmax.f32 %v208_v51, %v209_v52  ;;  %v689_v51 = vld [vmem:[%s952_s0 + $0x10] sm:$0xff] }
 0x77d   :  { %v211_v54 = vrot.slane %v210_v53, 2 }
 0x77f   :  { %v212_v55 = vmax.f32 %v210_v53, %v211_v54  ;;  %v691_v53 = vld [vmem:[%s953_s1 + $0x10] sm:$0xff] }
 0x780   :  { %v354_v54 = vmul.f32 %v691_v53, %v689_v51 }
 0x781   :  { %v213_v56 = vrot.slane %v212_v55, 1 }
 0x783   :  { %v214_v57 = vmax.f32 %v212_v55, %v213_v56 }
 0x785   :  { %720 = vpush %v214_v57 }
 0x7b6   :  { %s721_s6 = spop %720 }
 0x7b7   :  { %v216_v58 = vstv %s721_s6 }
 0x7b8   :  { %vm217_vm6 = vcmp.ge.f32.partialorder %v204_v48, %v216_v58  ;;  %vm218_vm7 = vcmp.ge.f32.partialorder %v205_v49, %v216_v58 }
 0x7b9   :  { %v219_v59 = vsel %vm217_vm6, -inf, %v204_v48  ;;  %v220_v60 = vsel %vm218_vm7, -inf, %v205_v49  ;;  %v690_v49 = vld [vmem:[%s952_s0 + $0x18] sm:$0x1]  ;;  %s813_s0 = smov 8  }
 0x7ba   :  { %v221_v61 = vmax.f32 %v219_v59, %v220_v60  ;;  %v355_v52 = vmul.f32 %v692_v50, %v690_v49 }
 0x7bc   :  { %222 = vmax.xlane.f32.xlu1 %v221_v61  ;;  %700 = vmatpush.msk.msra.mxu3 %vm38_vm0, %v355_v52 }
 0x7bd   :  { %693 = vmatpush.msk.msra.mxu1 %vm38_vm0, %v355_v52 }
 0x7be   :  { %701 = vmatpush.msra.mxu3 %v354_v54 }
 0x7bf   :  { %374 = vmatpush.msra.mxu1 %v354_v54  ;;  %696 = vmatmul.msk.f32.vlgmr.msra.gmra.mxu3 %vm25_vm1, %v850_v6 }
 0x7c7   :  { %697 = vmatmul.msk.f32.gmra.mxu3 %vm25_vm1, %v858_v7 }
 0x82f   :  { %v223_v62 = vpop.xlane.xlu1 %222 }
 0x830   :  { %v224_v63 = vrot.slane %v223_v62, 4 }
 0x832   :  { %v225_v0 = vmax.f32 %v223_v62, %v224_v63 }
 0x834   :  { %v226_v1 = vrot.slane %v225_v0, 2 }
 0x836   :  { %v227_v2 = vmax.f32 %v225_v0, %v226_v1 }
 0x838   :  { %v228_v3 = vrot.slane %v227_v2, 1 }
 0x83a   :  { %v229_v4 = vmax.f32 %v227_v2, %v228_v3  ;;  %v15_v3 = vld [vmem:[%s954_s2] sm:$0xff] }
 0x83b   :  { %685 = vmatmul.msk.f32.vlgmr.msra.gmra.mxu0 %vm25_vm1, %v15_v3  ;;  %694 = vmatmul.msk.f32.vlgmr.msra.gmra.mxu1 %vm25_vm1, %v15_v3 }
 0x83c   :  { %722 = vpush %v229_v4  ;;  %v16_v4 = vld [vmem:[%s954_s2 + $0x8] sm:$0xff] }
 0x843   :  { %686 = vmatmul.msk.f32.gmra.mxu0 %vm25_vm1, %v16_v4  ;;  %695 = vmatmul.msk.f32.gmra.mxu1 %vm25_vm1, %v16_v4 }
 0x86d   :  { %s723_s7 = spop %722 }
 0x86e   :  { %v231_v5 = vstv %s723_s7 }
 0x86f   :  { %vm232_vm8 = vcmp.ge.f32.partialorder %v219_v59, %v231_v5  ;;  %vm233_vm9 = vcmp.ge.f32.partialorder %v220_v60, %v231_v5 }
 0x870   :  { %v234_v10 = vsel %vm232_vm8, -inf, %v219_v59  ;;  %v235_v11 = vsel %vm233_vm9, -inf, %v220_v60  ;;  %v904_v59 = vpop.f32.mrf.mxu3 }
 0x871   :  { %v236_v12 = vmax.f32 %v234_v10, %v235_v11 }
 0x873   :  { %237 = vmax.xlane.f32.xlu2 %v236_v12 }
 0x878   :  { %v906_v60 = vpop.f32.mrf.mxu3 }
 0x879   :  { %v388_v61 = vmax.f32 %v904_v59, %v906_v60 }
 0x8e6   :  { %v238_v13 = vpop.xlane.xlu2 %237 }
 0x8e7   :  { %v239_v14 = vrot.slane %v238_v13, 4 }
 0x8e9   :  { %v240_v15 = vmax.f32 %v238_v13, %v239_v14 }
 0x8eb   :  { %v241_v16 = vrot.slane %v240_v15, 2 }
 0x8ed   :  { %v242_v17 = vmax.f32 %v240_v15, %v241_v16 }
 0x8ef   :  { %v243_v19 = vrot.slane %v242_v17, 1 }
 0x8f1   :  { %v244_v20 = vmax.f32 %v242_v17, %v243_v19 }
 0x8f3   :  { %724 = vpush %v244_v20 }
 0x924   :  { %s725_s8 = spop %724 }
 0x925   :  { %v246_v21 = vstv %s725_s8 }
 0x926   :  { %vm247_vm10 = vcmp.ge.f32.partialorder %v234_v10, %v246_v21  ;;  %vm248_vm11 = vcmp.ge.f32.partialorder %v235_v11, %v246_v21 }
 0x927   :  { %v249_v22 = vsel %vm247_vm10, -inf, %v234_v10  ;;  %v250_v23 = vsel %vm248_vm11, -inf, %v235_v11 }
 0x928   :  { %v251_v24 = vmax.f32 %v249_v22, %v250_v23 }
 0x92a   :  { %252 = vmax.xlane.f32.xlu0 %v251_v24 }
 0x99d   :  { %v253_v25 = vpop.xlane.xlu0 %252 }
 0x99e   :  { %v254_v26 = vrot.slane %v253_v25, 4 }
 0x9a0   :  { %v255_v27 = vmax.f32 %v253_v25, %v254_v26 }
 0x9a2   :  { %v256_v28 = vrot.slane %v255_v27, 2 }
 0x9a4   :  { %v257_v29 = vmax.f32 %v255_v27, %v256_v28 }
 0x9a6   :  { %v258_v30 = vrot.slane %v257_v29, 1 }
 0x9a8   :  { %v259_v31 = vmax.f32 %v257_v29, %v258_v30 }
 0x9aa   :  { %726 = vpush %v259_v31 }
 0x9db   :  { %s727_s9 = spop %726 }
 0x9dc   :  { %v261_v36 = vstv %s727_s9 }
 0x9dd   :  { %vm262_vm12 = vcmp.ge.f32.partialorder %v249_v22, %v261_v36  ;;  %vm263_vm13 = vcmp.ge.f32.partialorder %v250_v23, %v261_v36 }
 0x9de   :  { %v264_v37 = vsel %vm262_vm12, -inf, %v249_v22  ;;  %v265_v38 = vsel %vm263_vm13, -inf, %v250_v23 }
 0x9df   :  { %v266_v39 = vmax.f32 %v264_v37, %v265_v38 }
 0x9e1   :  { %267 = vmax.xlane.f32.xlu1 %v266_v39 }
 0x9e9   :  { %313 = vadd.xlane.f32.xlu1 %v312_v42 }
 0xa54   :  { %v268_v18 = vpop.xlane.xlu1 %267 }
 0xa55   :  { %v269_v43 = vrot.slane %v268_v18, 4 }
 0xa57   :  { %v270_v44 = vmax.f32 %v268_v18, %v269_v43  ;;  %v59_v43 = vpop.f32.mrf.mxu0 }
 0xa59   :  { %v271_v45 = vrot.slane %v270_v44, 2 }
 0xa5b   :  { %v272_v46 = vmax.f32 %v270_v44, %v271_v45 }
 0xa5c   :  { %v314_v13 = vpop.xlane.xlu1 %313 }
 0xa5d   :  { %v273_v47 = vrot.slane %v272_v46, 1  ;;  %v315_v15 = vrot.slane %v314_v13, 4 }
 0xa5f   :  { %v274_v48 = vmax.f32 %v272_v46, %v273_v47  ;;  %v316_v17 = vadd.f32 %v315_v15, %v314_v13  ;;  %v62_v54 = vpop.f32.mrf.mxu0 }
 0xa61   :  { %728 = vpush %v274_v48  ;;  %v317_v20 = vrot.slane %v316_v17, 2 }
 0xa63   :  { %v318_v25 = vadd.f32 %v317_v20, %v316_v17 }
 0xa65   :  { %v319_v29 = vrot.slane %v318_v25, 1 }
 0xa67   :  { %v320_v33 = vadd.f32 %v319_v29, %v318_v25 }
 0xa92   :  { %s729_s18 = spop %728 }
 0xa93   :  { %v276_v55 = vstv %s729_s18  ;;  %s812_s18 = smov 128  }
 0xa94   :  { %vm277_vm14 = vcmp.ge.f32.partialorder %v264_v37, %v276_v55  ;;  %vm278_vm15 = vcmp.ge.f32.partialorder %v265_v38, %v276_v55 }
 0xa95   :  { %v279_v56 = vsel %vm277_vm14, -inf, %v264_v37  ;;  %v280_v57 = vsel %vm278_vm15, -inf, %v265_v38 }
 0xa96   :  { %v281_v58 = vmax.f32 %v279_v56, %v280_v57 }
 0xa98   :  { %282 = vmax.xlane.f32.xlu2 %v281_v58 }
 0xaa0   :  { %389 = vmax.xlane.f32.xlu2 %v388_v61 }
 0xb0b   :  { %v283_v62 = vpop.xlane.xlu2 %282 }
 0xb0c   :  { %v284_v6 = vrot.slane %v283_v62, 4 }
 0xb0e   :  { %v285_v63 = vmax.f32 %v283_v62, %v284_v6 }
 0xb10   :  { %v286_v7 = vrot.slane %v285_v63, 2 }
 0xb12   :  { %v287_v0 = vmax.f32 %v285_v63, %v286_v7 }
 0xb13   :  { %v390_v14 = vpop.xlane.xlu2 %389 }
 0xb14   :  { %v288_v1 = vrot.slane %v287_v0, 1  ;;  %v391_v16 = vrot.slane %v390_v14, 4 }
 0xb16   :  { %v289_v2 = vmax.f32 %v287_v0, %v288_v1  ;;  %v392_v19 = vmax.f32 %v390_v14, %v391_v16 }
 0xb18   :  { %730 = vpush %v289_v2  ;;  %v393_v22 = vrot.slane %v392_v19, 2 }
 0xb1a   :  { %v394_v27 = vmax.f32 %v392_v19, %v393_v22 }
 0xb1c   :  { %v395_v31 = vrot.slane %v394_v27, 1 }
 0xb1e   :  { %v396_v34 = vmax.f32 %v394_v27, %v395_v31 }
 0xb49   :  { %s731_s21 = spop %730 }
 0xb4a   :  { %v291_v5 = vstv %s731_s21 }
 0xb4b   :  { %vm292_vm0 = vcmp.ge.f32.partialorder %v279_v56, %v291_v5  ;;  %vm293_vm2 = vcmp.ge.f32.partialorder %v280_v57, %v291_v5 }
 0xb4c   :  { %v294_v10 = vsel %vm292_vm0, -inf, %v279_v56  ;;  %v295_v11 = vsel %vm293_vm2, -inf, %v280_v57 }
 0xb4d   :  { %v296_v12 = vmax.f32 %v294_v10, %v295_v11 }
 0xb4f   :  { %297 = vmax.xlane.f32.xlu0 %v296_v12 }
 0xbc2   :  { %v298_v21 = vpop.xlane.xlu0 %297 }
 0xbc3   :  { %v299_v23 = vrot.slane %v298_v21, 4 }
 0xbc5   :  { %v300_v24 = vmax.f32 %v298_v21, %v299_v23 }
 0xbc7   :  { %v301_v26 = vrot.slane %v300_v24, 2 }
 0xbc9   :  { %v302_v28 = vmax.f32 %v300_v24, %v301_v26 }
 0xbcb   :  { %v303_v30 = vrot.slane %v302_v28, 1 }
 0xbcd   :  { %v304_v32 = vmax.f32 %v302_v28, %v303_v30 }
 0xbcf   :  { %732 = vpush %v304_v32 }
 0xbd0   :  { %734 = vpush %v320_v33 }
 0xbd1   :  { %736 = vpush %v396_v34 }
 0xc00   :  { %s920_s2 = spop %732 }
 0xc01   :  { %s735_s22 = spop %734  ;;  %v339_v50 = vstv %s920_s2 }
 0xc02   :  { %v322_v35 = vstv %s735_s22  ;;  %s737_s23 = spop %736  ;;  %vm340_vm8 = vcmp.ge.f32.partialorder %v862_v8, %v339_v50  ;;  %vm341_vm9 = vcmp.ge.f32.partialorder %v864_v9, %v339_v50 }
 0xc03   :  { %777 = vrcp.f32 %v322_v35  ;;  %v922_v36 = vstv %s737_s23  ;;  %v334_v45 = vand.u32 2147483648, %v322_v35  ;;  %v332_v47 = vand.u32 2147483647, %v322_v35 }
 0xc04   :  { %vm399_vm1 = vcmp.ge.f32.partialorder %v904_v59, %v922_v36  ;;  %vm400_vm3 = vcmp.ge.f32.partialorder %v906_v60, %v922_v36  ;;  %vm328_vm5 = vweird.f32 %v322_v35 }
 0xc05   :  { %v401_v37 = vsel %vm399_vm1, -inf, %v904_v59  ;;  %v402_v38 = vsel %vm400_vm3, -inf, %v906_v60  ;;  %v335_v49 = vor.u32 1.1754944e-38, %v334_v45  ;;  %vm333_vm7 = vcmp.eq.f32.partialorder %v332_v47, 8.507059e+37 }
 0xc06   :  { %v403_v39 = vmax.f32 %v401_v37, %v402_v38 }
 0xc08   :  { %404 = vmax.xlane.f32.xlu0 %v403_v39 }
 0xc09   :  { %v778_v42 = vpop.eup %777 }
 0xc0a   :  { %v324_v18 = vmul.f32 %v778_v42, %v322_v35  ;;  %vm329_vm4 = vweird.f32 %v778_v42 }
 0xc0b   :  { %vm330_vm6 = vmor %vm328_vm5, %vm329_vm4 }
 0xc0c   :  { %v325_v44 = vsub.f32 1.0, %v324_v18 }
 0xc0e   :  { %v326_v46 = vmul.f32 %v778_v42, %v325_v44 }
 0xc10   :  { %v327_v48 = vadd.f32 %v778_v42, %v326_v46 }
 0xc12   :  { %v331_v51 = vsel %vm330_vm6, %v778_v42, %v327_v48 }
 0xc13   :  { %v336_v52 = vsel %vm333_vm7, %v335_v49, %v331_v51 }
 0xc14   :  { %v337_v53 = vmul.f32 %v880_v40, %v336_v52  ;;  %v338_v55 = vmul.f32 %v882_v41, %v336_v52 }
 0xc16   :  { %v342_v56 = vsel %vm340_vm8, %v337_v53, 0.0  ;;  %v343_v57 = vsel %vm341_vm9, %v338_v55, 0.0 }
 0xc17   :  { %v344_v58 = vmul.f32 %v342_v56, %v59_v43  ;;  %v345_v61 = vmul.f32 %v343_v57, %v62_v54 }
 0xc19   :  { %346 = vst [vmem:[#allocation2] sm:$0xff] %v344_v58 }
 0xc1a   :  { %347 = vst [vmem:[#allocation2 + $0x8] sm:$0xff] %v345_v61 }
 0xc7b   :  { %v405_v62 = vpop.xlane.xlu0 %404 }
 0xc7c   :  { %v406_v6 = vrot.slane %v405_v62, 4 }
 0xc7e   :  { %v407_v63 = vmax.f32 %v405_v62, %v406_v6 }
 0xc80   :  { %v408_v7 = vrot.slane %v407_v63, 2 }
 0xc82   :  { %v409_v0 = vmax.f32 %v407_v63, %v408_v7 }
 0xc84   :  { %v410_v1 = vrot.slane %v409_v0, 1 }
 0xc86   :  { %v411_v40 = vmax.f32 %v409_v0, %v410_v1 }
 0xc88   :  { %738 = vpush %v411_v40 }
 0xcb9   :  { %s739_s24 = spop %738 }
 0xcba   :  { %v413_v41 = vstv %s739_s24 }
 0xcbb   :  { %vm414_vm10 = vcmp.ge.f32.partialorder %v401_v37, %v413_v41  ;;  %vm415_vm11 = vcmp.ge.f32.partialorder %v402_v38, %v413_v41 }
 0xcbc   :  { %v416_v8 = vsel %vm414_vm10, -inf, %v401_v37  ;;  %v417_v9 = vsel %vm415_vm11, -inf, %v402_v38 }
 0xcbd   :  { %v418_v2 = vmax.f32 %v416_v8, %v417_v9 }
 0xcbf   :  { %419 = vmax.xlane.f32.xlu1 %v418_v2 }
 0xd32   :  { %v420_v3 = vpop.xlane.xlu1 %419 }
 0xd33   :  { %v421_v4 = vrot.slane %v420_v3, 4 }
 0xd35   :  { %v422_v5 = vmax.f32 %v420_v3, %v421_v4 }
 0xd37   :  { %v423_v10 = vrot.slane %v422_v5, 2 }
 0xd39   :  { %v424_v11 = vmax.f32 %v422_v5, %v423_v10 }
 0xd3b   :  { %v425_v12 = vrot.slane %v424_v11, 1 }
 0xd3d   :  { %v426_v13 = vmax.f32 %v424_v11, %v425_v12 }
 0xd3f   :  { %740 = vpush %v426_v13 }
 0xd70   :  { %s741_s25 = spop %740 }
 0xd71   :  { %v428_v14 = vstv %s741_s25 }
 0xd72   :  { %vm429_vm12 = vcmp.ge.f32.partialorder %v416_v8, %v428_v14  ;;  %vm430_vm13 = vcmp.ge.f32.partialorder %v417_v9, %v428_v14 }
 0xd73   :  { %v431_v15 = vsel %vm429_vm12, -inf, %v416_v8  ;;  %v432_v16 = vsel %vm430_vm13, -inf, %v417_v9 }
 0xd74   :  { %v433_v17 = vmax.f32 %v431_v15, %v432_v16 }
 0xd76   :  { %434 = vmax.xlane.f32.xlu2 %v433_v17 }
 0xde9   :  { %v435_v19 = vpop.xlane.xlu2 %434 }
 0xdea   :  { %v436_v20 = vrot.slane %v435_v19, 4 }
 0xdec   :  { %v437_v21 = vmax.f32 %v435_v19, %v436_v20 }
 0xdee   :  { %v438_v22 = vrot.slane %v437_v21, 2 }
 0xdf0   :  { %v439_v23 = vmax.f32 %v437_v21, %v438_v22 }
 0xdf2   :  { %v440_v24 = vrot.slane %v439_v23, 1 }
 0xdf4   :  { %v441_v25 = vmax.f32 %v439_v23, %v440_v24 }
 0xdf6   :  { %742 = vpush %v441_v25 }
 0xe27   :  { %s743_s26 = spop %742 }
 0xe28   :  { %v443_v26 = vstv %s743_s26 }
 0xe29   :  { %vm444_vm14 = vcmp.ge.f32.partialorder %v431_v15, %v443_v26  ;;  %vm445_vm15 = vcmp.ge.f32.partialorder %v432_v16, %v443_v26 }
 0xe2a   :  { %v446_v27 = vsel %vm444_vm14, -inf, %v431_v15  ;;  %v447_v28 = vsel %vm445_vm15, -inf, %v432_v16 }
 0xe2b   :  { %v448_v29 = vmax.f32 %v446_v27, %v447_v28 }
 0xe2d   :  { %449 = vmax.xlane.f32.xlu0 %v448_v29 }
 0xea0   :  { %v450_v30 = vpop.xlane.xlu0 %449 }
 0xea1   :  { %v451_v31 = vrot.slane %v450_v30, 4 }
 0xea3   :  { %v452_v32 = vmax.f32 %v450_v30, %v451_v31 }
 0xea5   :  { %v453_v33 = vrot.slane %v452_v32, 2 }
 0xea7   :  { %v454_v34 = vmax.f32 %v452_v32, %v453_v33 }
 0xea9   :  { %v455_v35 = vrot.slane %v454_v34, 1 }
 0xeab   :  { %v456_v37 = vmax.f32 %v454_v34, %v455_v35 }
 0xead   :  { %744 = vpush %v456_v37 }
 0xede   :  { %s745_s27 = spop %744 }
 0xedf   :  { %v458_v38 = vstv %s745_s27 }
 0xee0   :  { %vm459_vm0 = vcmp.ge.f32.partialorder %v446_v27, %v458_v38  ;;  %vm460_vm2 = vcmp.ge.f32.partialorder %v447_v28, %v458_v38 }
 0xee1   :  { %v461_v39 = vsel %vm459_vm0, -inf, %v446_v27  ;;  %v462_v42 = vsel %vm460_vm2, -inf, %v447_v28 }
 0xee2   :  { %v463_v18 = vmax.f32 %v461_v39, %v462_v42 }
 0xee4   :  { %464 = vmax.xlane.f32.xlu1 %v463_v18 }
 0xf57   :  { %v465_v43 = vpop.xlane.xlu1 %464 }
 0xf58   :  { %v466_v44 = vrot.slane %v465_v43, 4 }
 0xf5a   :  { %v467_v45 = vmax.f32 %v465_v43, %v466_v44 }
 0xf5c   :  { %v468_v46 = vrot.slane %v467_v45, 2 }
 0xf5e   :  { %v469_v47 = vmax.f32 %v467_v45, %v468_v46 }
 0xf60   :  { %v470_v48 = vrot.slane %v469_v47, 1 }
 0xf62   :  { %v471_v49 = vmax.f32 %v469_v47, %v470_v48 }
 0xf64   :  { %746 = vpush %v471_v49 }
 0xf95   :  { %s747_s28 = spop %746 }
 0xf96   :  { %v473_v50 = vstv %s747_s28 }
 0xf97   :  { %vm474_vm1 = vcmp.ge.f32.partialorder %v461_v39, %v473_v50  ;;  %vm475_vm3 = vcmp.ge.f32.partialorder %v462_v42, %v473_v50 }
 0xf98   :  { %v476_v51 = vsel %vm474_vm1, -inf, %v461_v39  ;;  %v477_v52 = vsel %vm475_vm3, -inf, %v462_v42 }
 0xf99   :  { %v478_v53 = vmax.f32 %v476_v51, %v477_v52 }
 0xf9b   :  { %479 = vmax.xlane.f32.xlu2 %v478_v53 }
0x100e   :  { %v480_v54 = vpop.xlane.xlu2 %479 }
0x100f   :  { %v481_v55 = vrot.slane %v480_v54, 4 }
0x1011   :  { %v482_v56 = vmax.f32 %v480_v54, %v481_v55 }
0x1013   :  { %v483_v57 = vrot.slane %v482_v56, 2 }
0x1015   :  { %v484_v58 = vmax.f32 %v482_v56, %v483_v57 }
0x1017   :  { %v485_v61 = vrot.slane %v484_v58, 1 }
0x1019   :  { %v486_v62 = vmax.f32 %v484_v58, %v485_v61 }
0x101b   :  { %748 = vpush %v486_v62 }
0x104c   :  { %s749_s29 = spop %748 }
0x104d   :  { %v488_v6 = vstv %s749_s29 }
0x104e   :  { %vm489_vm4 = vcmp.ge.f32.partialorder %v476_v51, %v488_v6  ;;  %vm490_vm5 = vcmp.ge.f32.partialorder %v477_v52, %v488_v6 }
0x104f   :  { %v491_v63 = vsel %vm489_vm4, -inf, %v476_v51  ;;  %v492_v7 = vsel %vm490_vm5, -inf, %v477_v52 }
0x1050   :  { %v493_v0 = vmax.f32 %v491_v63, %v492_v7 }
0x1052   :  { %494 = vmax.xlane.f32.xlu0 %v493_v0 }
0x10c5   :  { %v495_v1 = vpop.xlane.xlu0 %494 }
0x10c6   :  { %v496_v40 = vrot.slane %v495_v1, 4 }
0x10c8   :  { %v497_v41 = vmax.f32 %v495_v1, %v496_v40  ;;  %v623_v40 = vsub.f32 %v904_v59, %v922_v36 }
0x10ca   :  { %v498_v8 = vrot.slane %v497_v41, 2 }
0x10cc   :  { %v499_v9 = vmax.f32 %v497_v41, %v498_v8  ;;  %v624_v41 = vsub.f32 %v906_v60, %v922_v36  ;;  %v625_v8 = vmul.f32 1.442695, %v623_v40 }
0x10ce   :  { %v500_v2 = vrot.slane %v499_v9, 1  ;;  %779 = vpow2.f32 %v625_v8 }
0x10d0   :  { %v501_v3 = vmax.f32 %v499_v9, %v500_v2  ;;  %v627_v9 = vmul.f32 1.442695, %v624_v41 }
0x10d2   :  { %750 = vpush %v501_v3  ;;  %781 = vpow2.f32 %v627_v9 }
0x1103   :  { %s751_s30 = spop %750 }
0x1104   :  { %v503_v4 = vstv %s751_s30 }
0x1105   :  { %vm504_vm6 = vcmp.ge.f32.partialorder %v491_v63, %v503_v4  ;;  %vm505_vm7 = vcmp.ge.f32.partialorder %v492_v7, %v503_v4 }
0x1106   :  { %v506_v5 = vsel %vm504_vm6, -inf, %v491_v63  ;;  %v507_v10 = vsel %vm505_vm7, -inf, %v492_v7 }
0x1107   :  { %v508_v11 = vmax.f32 %v506_v5, %v507_v10 }
0x1109   :  { %509 = vmax.xlane.f32.xlu1 %v508_v11 }
0x117c   :  { %v510_v12 = vpop.xlane.xlu1 %509 }
0x117d   :  { %v511_v13 = vrot.slane %v510_v12, 4 }
0x117f   :  { %v512_v14 = vmax.f32 %v510_v12, %v511_v13 }
0x1181   :  { %v513_v15 = vrot.slane %v512_v14, 2 }
0x1183   :  { %v514_v16 = vmax.f32 %v512_v14, %v513_v15 }
0x1185   :  { %v515_v17 = vrot.slane %v514_v16, 1 }
0x1187   :  { %v516_v19 = vmax.f32 %v514_v16, %v515_v17 }
0x1189   :  { %752 = vpush %v516_v19 }
0x11ba   :  { %s753_s4 = spop %752 }
0x11bb   :  { %v518_v20 = vstv %s753_s4 }
0x11bc   :  { %vm519_vm8 = vcmp.ge.f32.partialorder %v506_v5, %v518_v20  ;;  %vm520_vm9 = vcmp.ge.f32.partialorder %v507_v10, %v518_v20 }
0x11bd   :  { %v521_v21 = vsel %vm519_vm8, -inf, %v506_v5  ;;  %v522_v22 = vsel %vm520_vm9, -inf, %v507_v10  ;;  %v939_v10 = vpop.eup %779 }
0x11be   :  { %v523_v23 = vmax.f32 %v521_v21, %v522_v22  ;;  %v941_v11 = vpop.eup %781 }
0x11bf   :  { %v629_v12 = vadd.f32 %v941_v11, %v939_v10 }
0x11c0   :  { %524 = vmax.xlane.f32.xlu2 %v523_v23 }
0x1233   :  { %v525_v24 = vpop.xlane.xlu2 %524 }
0x1234   :  { %v526_v25 = vrot.slane %v525_v24, 4 }
0x1236   :  { %v527_v26 = vmax.f32 %v525_v24, %v526_v25 }
0x1238   :  { %v528_v27 = vrot.slane %v527_v26, 2 }
0x123a   :  { %v529_v28 = vmax.f32 %v527_v26, %v528_v27 }
0x123c   :  { %v530_v29 = vrot.slane %v529_v28, 1 }
0x123e   :  { %v531_v30 = vmax.f32 %v529_v28, %v530_v29 }
0x1240   :  { %754 = vpush %v531_v30 }
0x1271   :  { %s755_s5 = spop %754 }
0x1272   :  { %v533_v31 = vstv %s755_s5 }
0x1273   :  { %vm534_vm10 = vcmp.ge.f32.partialorder %v521_v21, %v533_v31  ;;  %vm535_vm11 = vcmp.ge.f32.partialorder %v522_v22, %v533_v31 }
0x1274   :  { %v536_v32 = vsel %vm534_vm10, -inf, %v521_v21  ;;  %v537_v33 = vsel %vm535_vm11, -inf, %v522_v22 }
0x1275   :  { %v538_v34 = vmax.f32 %v536_v32, %v537_v33 }
0x1277   :  { %539 = vmax.xlane.f32.xlu0 %v538_v34 }
0x12ea   :  { %v540_v35 = vpop.xlane.xlu0 %539 }
0x12eb   :  { %v541_v37 = vrot.slane %v540_v35, 4 }
0x12ed   :  { %v542_v38 = vmax.f32 %v540_v35, %v541_v37 }
0x12ef   :  { %v543_v39 = vrot.slane %v542_v38, 2 }
0x12f1   :  { %v544_v42 = vmax.f32 %v542_v38, %v543_v39 }
0x12f3   :  { %v545_v18 = vrot.slane %v544_v42, 1 }
0x12f5   :  { %v546_v43 = vmax.f32 %v544_v42, %v545_v18 }
0x12f7   :  { %756 = vpush %v546_v43 }
0x1328   :  { %s757_s6 = spop %756 }
0x1329   :  { %v548_v44 = vstv %s757_s6 }
0x132a   :  { %vm549_vm12 = vcmp.ge.f32.partialorder %v536_v32, %v548_v44  ;;  %vm550_vm13 = vcmp.ge.f32.partialorder %v537_v33, %v548_v44 }
0x132b   :  { %v551_v45 = vsel %vm549_vm12, -inf, %v536_v32  ;;  %v552_v46 = vsel %vm550_vm13, -inf, %v537_v33 }
0x132c   :  { %v553_v47 = vmax.f32 %v551_v45, %v552_v46 }
0x132e   :  { %554 = vmax.xlane.f32.xlu1 %v553_v47 }
0x13a1   :  { %v555_v48 = vpop.xlane.xlu1 %554 }
0x13a2   :  { %v556_v49 = vrot.slane %v555_v48, 4 }
0x13a4   :  { %v557_v50 = vmax.f32 %v555_v48, %v556_v49 }
0x13a6   :  { %v558_v51 = vrot.slane %v557_v50, 2 }
0x13a8   :  { %v559_v52 = vmax.f32 %v557_v50, %v558_v51 }
0x13aa   :  { %v560_v53 = vrot.slane %v559_v52, 1 }
0x13ac   :  { %v561_v54 = vmax.f32 %v559_v52, %v560_v53 }
0x13ae   :  { %758 = vpush %v561_v54  ;;  %v376_v54 = vpop.f32.mrf.mxu1 }
0x13df   :  { %s759_s7 = spop %758 }
0x13e0   :  { %v563_v55 = vstv %s759_s7 }
0x13e1   :  { %vm564_vm14 = vcmp.ge.f32.partialorder %v551_v45, %v563_v55  ;;  %vm565_vm15 = vcmp.ge.f32.partialorder %v552_v46, %v563_v55 }
0x13e2   :  { %v566_v56 = vsel %vm564_vm14, -inf, %v551_v45  ;;  %v567_v57 = vsel %vm565_vm15, -inf, %v552_v46 }
0x13e3   :  { %v568_v58 = vmax.f32 %v566_v56, %v567_v57 }
0x13e5   :  { %569 = vmax.xlane.f32.xlu2 %v568_v58 }
0x1458   :  { %v570_v61 = vpop.xlane.xlu2 %569 }
0x1459   :  { %v571_v62 = vrot.slane %v570_v61, 4 }
0x145b   :  { %v572_v6 = vmax.f32 %v570_v61, %v571_v62 }
0x145d   :  { %v573_v63 = vrot.slane %v572_v6, 2 }
0x145f   :  { %v574_v7 = vmax.f32 %v572_v6, %v573_v63 }
0x1461   :  { %v575_v0 = vrot.slane %v574_v7, 1 }
0x1463   :  { %v576_v1 = vmax.f32 %v574_v7, %v575_v0 }
0x1465   :  { %760 = vpush %v576_v1  ;;  %v379_v1 = vpop.f32.mrf.mxu1 }
0x1496   :  { %s761_s8 = spop %760 }
0x1497   :  { %v578_v2 = vstv %s761_s8 }
0x1498   :  { %vm579_vm0 = vcmp.ge.f32.partialorder %v566_v56, %v578_v2  ;;  %vm580_vm2 = vcmp.ge.f32.partialorder %v567_v57, %v578_v2 }
0x1499   :  { %v581_v3 = vsel %vm579_vm0, -inf, %v566_v56  ;;  %v582_v4 = vsel %vm580_vm2, -inf, %v567_v57 }
0x149a   :  { %v583_v5 = vmax.f32 %v581_v3, %v582_v4 }
0x149c   :  { %584 = vmax.xlane.f32.xlu0 %v583_v5 }
0x14a4   :  { %630 = vadd.xlane.f32.xlu0 %v629_v12 }
0x150f   :  { %v585_v36 = vpop.xlane.xlu0 %584 }
0x1510   :  { %v586_v13 = vrot.slane %v585_v36, 4 }
0x1512   :  { %v587_v14 = vmax.f32 %v585_v36, %v586_v13 }
0x1514   :  { %v588_v15 = vrot.slane %v587_v14, 2 }
0x1516   :  { %v589_v16 = vmax.f32 %v587_v14, %v588_v15 }
0x1517   :  { %v631_v35 = vpop.xlane.xlu0 %630 }
0x1518   :  { %v590_v17 = vrot.slane %v589_v16, 1  ;;  %v632_v37 = vrot.slane %v631_v35, 4 }
0x151a   :  { %v591_v19 = vmax.f32 %v589_v16, %v590_v17  ;;  %v633_v38 = vadd.f32 %v632_v37, %v631_v35 }
0x151c   :  { %762 = vpush %v591_v19  ;;  %v634_v39 = vrot.slane %v633_v38, 2 }
0x151e   :  { %v635_v44 = vadd.f32 %v634_v39, %v633_v38 }
0x1520   :  { %v636_v47 = vrot.slane %v635_v44, 1 }
0x1522   :  { %v637_v50 = vadd.f32 %v636_v47, %v635_v44 }
0x154d   :  { %s763_s9 = spop %762 }
0x154e   :  { %v593_v20 = vstv %s763_s9 }
0x154f   :  { %vm594_vm1 = vcmp.ge.f32.partialorder %v581_v3, %v593_v20  ;;  %vm595_vm3 = vcmp.ge.f32.partialorder %v582_v4, %v593_v20 }
0x1550   :  { %v596_v21 = vsel %vm594_vm1, -inf, %v581_v3  ;;  %v597_v22 = vsel %vm595_vm3, -inf, %v582_v4 }
0x1551   :  { %v598_v23 = vmax.f32 %v596_v21, %v597_v22 }
0x1553   :  { %599 = vmax.xlane.f32.xlu1 %v598_v23 }
0x15c6   :  { %v600_v24 = vpop.xlane.xlu1 %599 }
0x15c7   :  { %v601_v25 = vrot.slane %v600_v24, 4 }
0x15c9   :  { %v602_v26 = vmax.f32 %v600_v24, %v601_v25 }
0x15cb   :  { %v603_v27 = vrot.slane %v602_v26, 2 }
0x15cd   :  { %v604_v28 = vmax.f32 %v602_v26, %v603_v27 }
0x15cf   :  { %v605_v29 = vrot.slane %v604_v28, 1 }
0x15d1   :  { %v606_v30 = vmax.f32 %v604_v28, %v605_v29 }
0x15d3   :  { %764 = vpush %v606_v30 }
0x1604   :  { %s765_s10 = spop %764 }
0x1605   :  { %v608_v31 = vstv %s765_s10 }
0x1606   :  { %vm609_vm4 = vcmp.ge.f32.partialorder %v596_v21, %v608_v31  ;;  %vm610_vm5 = vcmp.ge.f32.partialorder %v597_v22, %v608_v31 }
0x1607   :  { %v611_v32 = vsel %vm609_vm4, -inf, %v596_v21  ;;  %v612_v33 = vsel %vm610_vm5, -inf, %v597_v22 }
0x1608   :  { %v613_v34 = vmax.f32 %v611_v32, %v612_v33 }
0x160a   :  { %614 = vmax.xlane.f32.xlu2 %v613_v34 }
0x167d   :  { %v615_v42 = vpop.xlane.xlu2 %614 }
0x167e   :  { %v616_v18 = vrot.slane %v615_v42, 4 }
0x1680   :  { %v617_v43 = vmax.f32 %v615_v42, %v616_v18 }
0x1682   :  { %v618_v45 = vrot.slane %v617_v43, 2 }
0x1684   :  { %v619_v46 = vmax.f32 %v617_v43, %v618_v45 }
0x1686   :  { %v620_v48 = vrot.slane %v619_v46, 1 }
0x1688   :  { %v621_v49 = vmax.f32 %v619_v46, %v620_v48 }
0x168a   :  { %766 = vpush %v621_v49 }
0x168b   :  { %768 = vpush %v637_v50 }
0x16bb   :  { %s767_s11 = spop %766 }
0x16bc   :  { %s769_s12 = spop %768  ;;  %v656_v6 = vstv %s767_s11 }
0x16bd   :  { %v639_v51 = vstv %s769_s12  ;;  %vm657_vm10 = vcmp.ge.f32.partialorder %v904_v59, %v656_v6  ;;  %vm658_vm11 = vcmp.ge.f32.partialorder %v906_v60, %v656_v6 }
0x16be   :  { %783 = vrcp.f32 %v639_v51  ;;  %v651_v56 = vand.u32 2147483648, %v639_v51  ;;  %v649_v58 = vand.u32 2147483647, %v639_v51  ;;  %vm645_vm7 = vweird.f32 %v639_v51 }
0x16c0   :  { %v652_v62 = vor.u32 1.1754944e-38, %v651_v56  ;;  %vm650_vm9 = vcmp.eq.f32.partialorder %v649_v58, 8.507059e+37 }
0x16c4   :  { %v784_v52 = vpop.eup %783 }
0x16c5   :  { %v641_v53 = vmul.f32 %v784_v52, %v639_v51  ;;  %vm646_vm6 = vweird.f32 %v784_v52 }
0x16c6   :  { %vm647_vm8 = vmor %vm645_vm7, %vm646_vm6 }
0x16c7   :  { %v642_v55 = vsub.f32 1.0, %v641_v53 }
0x16c9   :  { %v643_v57 = vmul.f32 %v784_v52, %v642_v55 }
0x16cb   :  { %v644_v61 = vadd.f32 %v784_v52, %v643_v57 }
0x16cd   :  { %v648_v63 = vsel %vm647_vm8, %v784_v52, %v644_v61 }
0x16ce   :  { %v653_v7 = vsel %vm650_vm9, %v652_v62, %v648_v63 }
0x16cf   :  { %v654_v0 = vmul.f32 %v939_v10, %v653_v7  ;;  %v655_v40 = vmul.f32 %v941_v11, %v653_v7 }
0x16d1   :  { %v659_v41 = vsel %vm657_vm10, %v654_v0, 0.0  ;;  %v660_v8 = vsel %vm658_vm11, %v655_v40, 0.0 }
0x16d2   :  { %v661_v9 = vmul.f32 %v659_v41, %v376_v54  ;;  %v662_v2 = vmul.f32 %v660_v8, %v379_v1 }
0x16d4   :  { %664 = vst [vmem:[#allocation2 + $0x10] sm:$0xff] %v661_v9 }
0x16d5   :  { %665 = vst [vmem:[#allocation2 + $0x18] sm:$0xff] %v662_v2 }
0x16d6   :  { %678 = dma.vmem_to_hbm [thread:$0]  %s671_s14, 512, %s673_s17, [#allocation3], %s812_s18, %s812_s18, %s813_s0  }
0x16d7   :  { %809 = dma.done.wait [#allocation3], 512  }
0x16d8   :  { %810 = vsyncadd [#allocation3], 4294966784 }
0x16d9   :  { %683 = vsyncpa [#allocation3], 1 }

</bundles_post_ra>
